<compile_context>
chip_gen: v5e
topology: v5e:2x2
jax: 0.10.0
libtpu: 0.0.40
codegen_flags: <defaults>
</compile_context>

<pallas_src>
import functools
import math

import jax
import jax.numpy as jnp
from jax.experimental import pallas as pl
from jax.experimental.pallas import tpu as pltpu


# --------------------------------------------------------------------------------------
# Per-generation configuration
# --------------------------------------------------------------------------------------

def _device_kind():
    try:
        return jax.devices()[0].device_kind.lower()
    except Exception:
        return ""


_KIND = _device_kind()
# v5e/v6e have a native int8 MXU (~2x bf16 rate); v7x does not, and unknown backends
# (e.g. CPU interpret) take the exact bf16-operand path.
_INT8_MXU = ("v5" in _KIND) or ("v6" in _KIND)
# 128 MiB physical VMEM on v5e/v6e, 64 MiB on v7x -> leave headroom.
_VMEM_LIMIT = (100 * 1024 * 1024) if _INT8_MXU else (48 * 1024 * 1024)
_ACC_DTYPE = jnp.int32 if _INT8_MXU else jnp.float32


def _tile(dim, pref):
    """Largest tile <= pref that divides dim; falls back to the full dim."""
    if dim <= pref:
        return dim
    if dim % pref == 0:
        return pref
    return dim  # TODO(synk): ragged dims would need masked epilogues


def _qdot(a, w):
    """int8-activation x int4-in-int8-weight tile matmul on the MXU.

    v5e/v6e: native integer MXU, int32 accumulation (no per-tile dtype casts).
    v7x / unknown: bf16 operands + f32 accumulation -- exact for the quantized math since
    |a*w| <= 127*8 and per-tile partial sums stay far below 2^24.
    """
    if _INT8_MXU:
        return jnp.dot(a, w, preferred_element_type=jnp.int32)
    return jnp.dot(a.astype(jnp.bfloat16), w.astype(jnp.bfloat16),
                   preferred_element_type=jnp.float32)


# --------------------------------------------------------------------------------------
# Kernels
# --------------------------------------------------------------------------------------

def rmsnorm_quant_kernel(x_ref, w_ref, o_ref, *, eps, inv_qscale):
    """RMSNormQ: rms-normalize, scale by weight, quantize to int8."""
    x = x_ref[...]
    var = jnp.mean(x * x, axis=-1, keepdims=True)
    y = x * jax.lax.rsqrt(var + eps) * w_ref[...]
    o_ref[...] = jnp.clip(jnp.round(y * inv_qscale), -128.0, 127.0).astype(jnp.int8)


def qkv_rope_quant_kernel(a_ref, w_ref, s_ref, b_ref, cos_ref, sin_ref, o_ref, acc_ref,
                          *, head_dim):
    """One tile of the fused q|k|v projection.

    K-accumulating int8 x int4 matmul; the last-K epilogue applies the per-column dequant
    scale + bias (already divided by the q/k/v quant scale), RoPE (identity on the V
    columns via cos=1 / sin=0) and the int8 re-quantization.
    """
    @pl.when(pl.program_id(2) == 0)
    def _():
        acc_ref[...] = jnp.zeros_like(acc_ref)

    acc_ref[...] += _qdot(a_ref[...], w_ref[...])

    @pl.when(pl.program_id(2) == pl.num_programs(2) - 1)
    def _():
        y = acc_ref[...].astype(jnp.float32) * s_ref[...] + b_ref[...]
        half = head_dim // 2
        tn = y.shape[1]
        col = jax.lax.broadcasted_iota(jnp.int32, y.shape, 1)
        lo_half = (col % head_dim) < half
        # rotate_half within each head: two non-negative XLU lane rotations + half select.
        # (tile start and width are multiples of head_dim, so rotations never mix heads
        #  on the selected positions.)
        x_minus = pltpu.roll(y, half, axis=1)        # y[c - half]  -> used on high halves
        x_plus = pltpu.roll(y, tn - half, axis=1)    # y[c + half]  -> used on low halves
        rot = jnp.where(lo_half, -x_plus, x_minus)
        out = y * cos_ref[...] + rot * sin_ref[...]
        o_ref[...] = jnp.clip(jnp.round(out), -128.0, 127.0).astype(jnp.int8)


def attn_causal_kernel(q_ref, k_ref, v_ref, o_ref, *, qk_scale, pv_scale):
    """Per-(batch, head) causal attention on int8 q/k/v slabs; int8 output for o_proj."""
    q = q_ref[0].astype(jnp.bfloat16)            # int8 values are exact in bf16
    k = k_ref[0].astype(jnp.bfloat16)
    s = jax.lax.dot_general(q, k, (((1,), (1,)), ((), ())),
                            preferred_element_type=jnp.float32)   # q @ k.T, exact
    s = s * qk_scale
    row = jax.lax.broadcasted_iota(jnp.int32, s.shape, 0)
    col = jax.lax.broadcasted_iota(jnp.int32, s.shape, 1)
    s = jnp.where(row >= col, s, -1e30)          # causal mask built in-kernel (no HBM mask)
    s = s - jnp.max(s, axis=-1, keepdims=True)
    p = jnp.exp(s)
    p = p * pl.reciprocal(jnp.sum(p, axis=-1, keepdims=True), approx=False)
    # bf16 PV matmul (v is int8 -> exact in bf16); v_scale and the o_proj input
    # quantization (clamp -127..127 per the reference) are fused into one epilogue.
    o = jnp.dot(p.astype(jnp.bfloat16), v_ref[0].astype(jnp.bfloat16),
                preferred_element_type=jnp.float32)
    o_ref[0] = jnp.clip(jnp.round(o * pv_scale), -127.0, 127.0).astype(jnp.int8)


def w4a8_linear_res_kernel(a_ref, w_ref, s_ref, b_ref, r_ref, o_ref, acc_ref):
    """Tiled W4A8BF32OF32 linear fused with the residual add (o_proj / down_proj paths)."""
    @pl.when(pl.program_id(2) == 0)
    def _():
        acc_ref[...] = jnp.zeros_like(acc_ref)

    acc_ref[...] += _qdot(a_ref[...], w_ref[...])

    @pl.when(pl.program_id(2) == pl.num_programs(2) - 1)
    def _():
        o_ref[...] = r_ref[...] + acc_ref[...].astype(jnp.float32) * s_ref[...] + b_ref[...]


def mlp_gateup_quant_kernel(a_ref, gw_ref, gs_ref, gb_ref, uw_ref, us_ref, ub_ref,
                            o_ref, gacc_ref, uacc_ref, *, inv_down_scale):
    """Fused gate/up projections, SiLU(gate)*up, int8 quantization for down_proj."""
    @pl.when(pl.program_id(2) == 0)
    def _():
        gacc_ref[...] = jnp.zeros_like(gacc_ref)
        uacc_ref[...] = jnp.zeros_like(uacc_ref)

    a = a_ref[...]
    gacc_ref[...] += _qdot(a, gw_ref[...])
    uacc_ref[...] += _qdot(a, uw_ref[...])

    @pl.when(pl.program_id(2) == pl.num_programs(2) - 1)
    def _():
        g = gacc_ref[...].astype(jnp.float32) * gs_ref[...] + gb_ref[...]
        u = uacc_ref[...].astype(jnp.float32) * us_ref[...] + ub_ref[...]
        x = (g * jax.nn.sigmoid(g)) * u
        o_ref[...] = jnp.clip(jnp.round(x * inv_down_scale), -128.0, 127.0).astype(jnp.int8)


# --------------------------------------------------------------------------------------
# Wrappers
# --------------------------------------------------------------------------------------

def rmsnorm_quant(x, w, *, eps, qscale, tm=512):
    T, H = x.shape
    tm = _tile(T, tm)
    return pl.pallas_call(
        functools.partial(rmsnorm_quant_kernel, eps=eps, inv_qscale=1.0 / qscale),
        out_shape=jax.ShapeDtypeStruct((T, H), jnp.int8),
        grid=(T // tm,),
        in_specs=[pl.BlockSpec((tm, H), lambda i: (i, 0)),
                  pl.BlockSpec((1, H), lambda i: (0, 0))],
        out_specs=pl.BlockSpec((tm, H), lambda i: (i, 0)),
        compiler_params=pltpu.CompilerParams(
            dimension_semantics=("parallel",), vmem_limit_bytes=_VMEM_LIMIT),
    )(x, w)


def qkv_rope_quant(a_i8, qkv_wt, qkv_s, qkv_b, cos, sin, *, head_dim, seq_len,
                   tm=256, tn=256, tk=512):
    """Fused q|k|v projection over the concatenated (H, 3H) weight, N/K tiled."""
    T, K = a_i8.shape
    N = qkv_wt.shape[1]
    tm = _tile(seq_len, tm)          # token tiles stay within one sequence (RoPE rows)
    tn = _tile(N, tn)
    if tn % head_dim:
        tn = N                       # RoPE needs whole heads per N tile
    tk = _tile(K, tk)
    n_pos = seq_len // tm
    # TODO(synk): pl.Buffered(3) on the weight spec would help hide DMA latency at decode.
    return pl.pallas_call(
        functools.partial(qkv_rope_quant_kernel, head_dim=head_dim),
        out_shape=jax.ShapeDtypeStruct((T, N), jnp.int8),
        grid=(T // tm, N // tn, K // tk),
        in_specs=[
            pl.BlockSpec((tm, tk), lambda i, j, k: (i, k)),          # int8 activations
            pl.BlockSpec((tk, tn), lambda i, j, k: (k, j)),          # fused (H, 3H) weight
            pl.BlockSpec((1, tn), lambda i, j, k: (0, j)),           # scale (incl. 1/qkv_scale)
            pl.BlockSpec((1, tn), lambda i, j, k: (0, j)),           # bias  (incl. 1/qkv_scale)
            pl.BlockSpec((tm, tn), lambda i, j, k: (i % n_pos, j)),  # cos (S, 3H)
            pl.BlockSpec((tm, tn), lambda i, j, k: (i % n_pos, j)),  # sin (S, 3H)
        ],
        out_specs=pl.BlockSpec((tm, tn), lambda i, j, k: (i, j)),
        scratch_shapes=[pltpu.VMEM((tm, tn), _ACC_DTYPE)],
        compiler_params=pltpu.CompilerParams(
            dimension_semantics=("parallel", "parallel", "arbitrary"),
            vmem_limit_bytes=_VMEM_LIMIT),
    )(a_i8, qkv_wt, qkv_s, qkv_b, cos, sin)


def attention_quant(qkv_i8, *, num_heads, head_dim, q_scale, k_scale, v_scale, out_scale):
    """Causal attention reading q/k/v head slabs straight out of the fused (B, S, 3H) qkv."""
    B, S, H3 = qkv_i8.shape
    H = H3 // 3
    NH = num_heads

    def head_spec(section):  # section: 0=q, 1=k, 2=v slab of the fused last dim
        return pl.BlockSpec((1, S, head_dim), lambda b, h: (b, 0, section * NH + h))

    return pl.pallas_call(
        functools.partial(attn_causal_kernel,
                          qk_scale=q_scale * k_scale / math.sqrt(head_dim),
                          pv_scale=v_scale / out_scale),
        out_shape=jax.ShapeDtypeStruct((B, S, H), jnp.int8),
        grid=(B, NH),
        in_specs=[head_spec(0), head_spec(1), head_spec(2)],
        out_specs=pl.BlockSpec((1, S, head_dim), lambda b, h: (b, 0, h)),
        compiler_params=pltpu.CompilerParams(
            dimension_semantics=("parallel", "parallel"), vmem_limit_bytes=_VMEM_LIMIT),
    )(qkv_i8, qkv_i8, qkv_i8)


def w4a8_linear_res(a_i8, w_t, scale, bias, residual, *, tm=256, tn=512, tk=512):
    T, K = a_i8.shape
    N = w_t.shape[1]
    tm, tn, tk = _tile(T, tm), _tile(N, tn), _tile(K, tk)
    return pl.pallas_call(
        w4a8_linear_res_kernel,
        out_shape=jax.ShapeDtypeStruct((T, N), jnp.float32),
        grid=(T // tm, N // tn, K // tk),
        in_specs=[
            pl.BlockSpec((tm, tk), lambda i, j, k: (i, k)),   # int8 activations
            pl.BlockSpec((tk, tn), lambda i, j, k: (k, j)),   # (in, out) int4-in-int8 weight
            pl.BlockSpec((1, tn), lambda i, j, k: (0, j)),    # fused input*weight scale
            pl.BlockSpec((1, tn), lambda i, j, k: (0, j)),    # bias
            pl.BlockSpec((tm, tn), lambda i, j, k: (i, j)),   # residual (aliased to output)
        ],
        out_specs=pl.BlockSpec((tm, tn), lambda i, j, k: (i, j)),
        scratch_shapes=[pltpu.VMEM((tm, tn), _ACC_DTYPE)],
        input_output_aliases={4: 0},
        compiler_params=pltpu.CompilerParams(
            dimension_semantics=("parallel", "parallel", "arbitrary"),
            vmem_limit_bytes=_VMEM_LIMIT),
    )(a_i8, w_t, scale, bias, residual)


def mlp_gateup_quant(a_i8, gw_t, gs, gb, uw_t, us, ub, *, down_scale,
                     tm=256, tn=512, tk=512):
    T, K = a_i8.shape
    N = gw_t.shape[1]
    tm, tn, tk = _tile(T, tm), _tile(N, tn), _tile(K, tk)
    return pl.pallas_call(
        functools.partial(mlp_gateup_quant_kernel, inv_down_scale=1.0 / down_scale),
        out_shape=jax.ShapeDtypeStruct((T, N), jnp.int8),
        grid=(T // tm, N // tn, K // tk),
        in_specs=[
            pl.BlockSpec((tm, tk), lambda i, j, k: (i, k)),
            pl.BlockSpec((tk, tn), lambda i, j, k: (k, j)),
            pl.BlockSpec((1, tn), lambda i, j, k: (0, j)),
            pl.BlockSpec((1, tn), lambda i, j, k: (0, j)),
            pl.BlockSpec((tk, tn), lambda i, j, k: (k, j)),
            pl.BlockSpec((1, tn), lambda i, j, k: (0, j)),
            pl.BlockSpec((1, tn), lambda i, j, k: (0, j)),
        ],
        out_specs=pl.BlockSpec((tm, tn), lambda i, j, k: (i, j)),
        scratch_shapes=[pltpu.VMEM((tm, tn), _ACC_DTYPE),
                        pltpu.VMEM((tm, tn), _ACC_DTYPE)],
        compiler_params=pltpu.CompilerParams(
            dimension_semantics=("parallel", "parallel", "arbitrary"),
            vmem_limit_bytes=_VMEM_LIMIT),
    )(a_i8, gw_t, gs, gb, uw_t, us, ub)


# --------------------------------------------------------------------------------------
# Host-side (load-time) parameter prep + fused RoPE tables
# --------------------------------------------------------------------------------------

def prepare_layer_params(raw, cfg):
    """One-time prep: transpose weights to (in, out), concatenate q|k|v, and fold the
    static input / output quant scales into the per-output-channel weight scales."""
    p = {"ln1_w": raw["ln1_w"].reshape(1, -1).astype(jnp.float32),
         "ln2_w": raw["ln2_w"].reshape(1, -1).astype(jnp.float32)}

    a_in = cfg["attn_input_scale"]
    qs, ks, vs = cfg["q_proj_scale"], cfg["k_proj_scale"], cfg["v_proj_scale"]

    p["qkv_wt"] = jnp.concatenate(
        [raw["q_w"].T, raw["k_w"].T, raw["v_w"].T], axis=1)          # (H, 3H) int8
    p["qkv_s"] = jnp.concatenate(
        [raw["q_ws"] * a_in / qs, raw["k_ws"] * a_in / ks, raw["v_ws"] * a_in / vs],
        axis=1).astype(jnp.float32)
    p["qkv_b"] = jnp.concatenate(
        [raw["q_b"] / qs, raw["k_b"] / ks, raw["v_b"] / vs], axis=1).astype(jnp.float32)

    def lin(prefix, in_scale):
        p[prefix + "_wt"] = jnp.transpose(raw[prefix + "_w"])        # (in, out) int8
        p[prefix + "_s"] = (raw[prefix + "_ws"] * in_scale).astype(jnp.float32)
        p[prefix + "_b"] = raw[prefix + "_b"].astype(jnp.float32)

    lin("o", cfg["out_input_scale"])
    lin("gate", cfg["mlp_input_scale"])
    lin("up", cfg["mlp_input_scale"])
    lin("down", cfg["down_input_scale"])
    return p


def rope_tables_fused(S, NH, HD, H, theta):
    """(S, 3H) cos/sin tables matching the fused q|k|v column layout; the V section is
    cos=1 / sin=0 so the in-kernel RoPE epilogue is branch-free."""
    inv_freq = 1.0 / (theta ** (jnp.arange(0, HD, 2, dtype=jnp.float32) / HD))
    t = jnp.arange(S, dtype=jnp.float32)
    freqs = jnp.outer(t, inv_freq)                      # (S, HD/2)
    emb = jnp.concatenate([freqs, freqs], axis=-1)      # (S, HD)
    cos_hd, sin_hd = jnp.cos(emb), jnp.sin(emb)
    cos = jnp.concatenate([jnp.tile(cos_hd, (1, 2 * NH)),
                           jnp.ones((S, H), jnp.float32)], axis=1)
    sin = jnp.concatenate([jnp.tile(sin_hd, (1, 2 * NH)),
                           jnp.zeros((S, H), jnp.float32)], axis=1)
    return cos, sin


# --------------------------------------------------------------------------------------
# Decoder-layer forward
# --------------------------------------------------------------------------------------

def decoder_layer_forward(x, params, cfg, attention_mask=None):
    # attention_mask: only the default causal mask is supported (built in-kernel).
    B, S, H = x.shape
    NH = cfg["num_heads"]          # assumes num_key_value_heads == num_attention_heads
    HD = H // NH
    T = B * S

    xf = x.reshape(T, H).astype(jnp.float32)
    residual = xf

    # --- self-attention block ---
    h_i8 = rmsnorm_quant(xf, params["ln1_w"], eps=cfg["rms_eps"],
                         qscale=cfg["attn_input_scale"])
    qkv_i8 = qkv_rope_quant(h_i8, params["qkv_wt"], params["qkv_s"], params["qkv_b"],
                            params["rope_cos"], params["rope_sin"],
                            head_dim=HD, seq_len=S)
    attn_i8 = attention_quant(qkv_i8.reshape(B, S, 3 * H),
                              num_heads=NH, head_dim=HD,
                              q_scale=cfg["q_proj_scale"], k_scale=cfg["k_proj_scale"],
                              v_scale=cfg["v_proj_scale"], out_scale=cfg["out_input_scale"])
    # o_proj + residual.add_  (residual aliased / updated in place)
    residual = w4a8_linear_res(attn_i8.reshape(T, H), params["o_wt"],
                               params["o_s"], params["o_b"], residual)

    # --- MLP block ---
    h2_i8 = rmsnorm_quant(residual, params["ln2_w"], eps=cfg["rms_eps"],
                          qscale=cfg["mlp_input_scale"])
    inter_i8 = mlp_gateup_quant(h2_i8,
                                params["gate_wt"], params["gate_s"], params["gate_b"],
                                params["up_wt"], params["up_s"], params["up_b"],
                                down_scale=cfg["down_input_scale"])
    residual = w4a8_linear_res(inter_i8, params["down_wt"],
                               params["down_s"], params["down_b"], residual)

    return residual.reshape(B, S, H)


# --------------------------------------------------------------------------------------
# Main: deterministic synthetic params + small aligned shapes
# --------------------------------------------------------------------------------------

if __name__ == "__main__":
    B, S = 2, 128
    NH = 2                 # num_attention_heads (= num_key_value_heads)
    HD = 128               # head_dim (lane-aligned)
    H = NH * HD            # hidden_size = 256
    I = 2 * H              # intermediate_size = 512

    cfg = dict(
        num_heads=NH,
        rms_eps=1e-6,
        rope_theta=10000.0,
        attn_input_scale=0.05,
        q_proj_scale=0.02,
        k_proj_scale=0.02,
        v_proj_scale=0.02,
        out_input_scale=0.02,
        mlp_input_scale=0.05,
        down_input_scale=0.02,
    )

    key = jax.random.PRNGKey(0)
    keys = jax.random.split(key, 32)

    def w4(k, out_f, in_f):       # 4-bit-valued weights in int8 containers
        return jax.random.randint(k, (out_f, in_f), -8, 8, dtype=jnp.int8)

    def wscale(k, out_f):         # per-output-channel dequant scales
        return (0.01 + 0.02 * jax.random.uniform(k, (1, out_f))).astype(jnp.float32)

    def bias(k, out_f):
        return (0.05 * jax.random.normal(k, (1, out_f))).astype(jnp.float32)

    raw = dict(
        ln1_w=(1.0 + 0.1 * jax.random.normal(keys[0], (H,))).astype(jnp.float32),
        ln2_w=(1.0 + 0.1 * jax.random.normal(keys[1], (H,))).astype(jnp.float32),
        q_w=w4(keys[2], H, H), q_ws=wscale(keys[3], H), q_b=bias(keys[4], H),
        k_w=w4(keys[5], H, H), k_ws=wscale(keys[6], H), k_b=bias(keys[7], H),
        v_w=w4(keys[8], H, H), v_ws=wscale(keys[9], H), v_b=bias(keys[10], H),
        o_w=w4(keys[11], H, H), o_ws=wscale(keys[12], H), o_b=bias(keys[13], H),
        gate_w=w4(keys[14], I, H), gate_ws=wscale(keys[15], I), gate_b=bias(keys[16], I),
        up_w=w4(keys[17], I, H), up_ws=wscale(keys[18], I), up_b=bias(keys[19], I),
        down_w=w4(keys[20], H, I), down_ws=wscale(keys[21], H), down_b=bias(keys[22], H),
    )
    params = prepare_layer_params(raw, cfg)
    # RoPE tables are layer/call-invariant -> precompute once.
    params["rope_cos"], params["rope_sin"] = rope_tables_fused(S, NH, HD, H,
                                                               cfg["rope_theta"])

    x = jax.random.normal(keys[23], (B, S, H), dtype=jnp.float32)

    out = decoder_layer_forward(x, params, cfg)
    out = jax.block_until_ready(out)
    assert out.shape == (B, S, H) and out.dtype == jnp.float32
    assert bool(jnp.isfinite(out).all())
    print("KERNEL_OK")
</pallas_src>

<mosaic_0001>
module attributes {stable_mosaic.version = 11 : i64} {
  func.func @rmsnorm_quant_kernel(%arg0: i32, %arg1: memref<256x256xf32, #tpu.memory_space<vmem>>, %arg2: memref<1x256xf32, #tpu.memory_space<vmem>>, %arg3: memref<256x256xi8, #tpu.memory_space<vmem>>) attributes {dimension_semantics = [#tpu.dimension_semantics<parallel>], iteration_bounds = array<i64: 1>, scalar_prefetch = 0 : i64, scratch_operands = 0 : i64, tpu.core_type = #tpu.core_type<tc>, window_params = [{transform_indices = @transform_0, window_bounds = array<i64: 256, 256>}, {pipeline_mode = #tpu.pipeline_mode<synchronous>, transform_indices = @transform_1, window_bounds = array<i64: 1, 256>}, {transform_indices = @transform_2, window_bounds = array<i64: 256, 256>}]} {
    %c0 = arith.constant 0 : index
    %c0_0 = arith.constant 0 : index
    %0 = vector.load %arg1[%c0, %c0_0] : memref<256x256xf32, #tpu.memory_space<vmem>>, vector<256x256xf32>
    %1 = arith.mulf %0, %0 : vector<256x256xf32>
    %cst = arith.constant dense<0.000000e+00> : vector<256xf32>
    %2 = vector.multi_reduction <add>, %1, %cst [1] : vector<256x256xf32> to vector<256xf32>
    %3 = vector.shape_cast %2 : vector<256xf32> to vector<256x1xf32>
    %cst_1 = arith.constant 2.560000e+02 : f32
    %4 = vector.broadcast %cst_1 : f32 to vector<256x1xf32>
    %5 = arith.divf %3, %4 : vector<256x1xf32>
    %cst_2 = arith.constant 9.99999997E-7 : f32
    %6 = vector.broadcast %cst_2 : f32 to vector<256x1xf32>
    %7 = arith.addf %5, %6 : vector<256x1xf32>
    %8 = math.rsqrt %7 : vector<256x1xf32>
    %9 = vector.broadcast %8 : vector<256x1xf32> to vector<256x256xf32>
    %10 = arith.mulf %0, %9 : vector<256x256xf32>
    %c0_3 = arith.constant 0 : index
    %c0_4 = arith.constant 0 : index
    %11 = vector.load %arg2[%c0_3, %c0_4] : memref<1x256xf32, #tpu.memory_space<vmem>>, vector<1x256xf32>
    %12 = vector.broadcast %11 : vector<1x256xf32> to vector<256x256xf32>
    %13 = arith.mulf %10, %12 : vector<256x256xf32>
    %cst_5 = arith.constant 2.000000e+01 : f32
    %14 = vector.broadcast %cst_5 : f32 to vector<256x256xf32>
    %15 = arith.mulf %13, %14 : vector<256x256xf32>
    %16 = math.roundeven %15 : vector<256x256xf32>
    %cst_6 = arith.constant -1.280000e+02 : f32
    %cst_7 = arith.constant 1.270000e+02 : f32
    %17 = vector.broadcast %cst_6 : f32 to vector<256x256xf32>
    %18 = arith.maximumf %17, %16 : vector<256x256xf32>
    %19 = vector.broadcast %cst_7 : f32 to vector<256x256xf32>
    %20 = arith.minimumf %19, %18 : vector<256x256xf32>
    %21 = arith.fptosi %20 : vector<256x256xf32> to vector<256x256xi8>
    %c0_8 = arith.constant 0 : index
    %c0_9 = arith.constant 0 : index
    %22 = vector.load %arg3[%c0_8, %c0_9] : memref<256x256xi8, #tpu.memory_space<vmem>>, vector<256x256xi8>
    tpu.vector_store %arg3[%c0_8, %c0_9], %21 {strides = array<i32>} : memref<256x256xi8, #tpu.memory_space<vmem>>, vector<256x256xi8>,
    return
  }
  func.func @transform_0(%arg0: i32) -> (i32, i32) {
    %c0_i32 = arith.constant 0 : i32
    %c0_i32_0 = arith.constant 0 : i32
    return %arg0, %c0_i32 : i32, i32
  }
  func.func @transform_1(%arg0: i32) -> (i32, i32) {
    %c0_i32 = arith.constant 0 : i32
    %c0_i32_0 = arith.constant 0 : i32
    %c0_i32_1 = arith.constant 0 : i32
    return %c0_i32, %c0_i32_0 : i32, i32
  }
  func.func @transform_2(%arg0: i32) -> (i32, i32) {
    %c0_i32 = arith.constant 0 : i32
    %c0_i32_0 = arith.constant 0 : i32
    return %arg0, %c0_i32 : i32, i32
  }
}

</mosaic_0001>

<bundles_post_ra>
// kernel: tpu_custom_call.1
= control target key start
LH: loop header
LB: loop body
LE: loop exit
PB: predicated region body
PF: predicated region fallthrough
CT: control target
= control target key end

     0   :  { %7 = vsyncpa [#allocation3], 0  ;;  %s2660_s0 = inlined_call_operand.hbm [shape: f32[256,256], index: 0, kind: input, shape index: {}]   ;;  %s2661_s1 = inlined_call_operand.hbm [shape: f32[1,256], index: 1, kind: input, shape index: {}]   ;;  %s2662_s2 = inlined_call_operand.hbm [shape: s8[256,256], index: 2, kind: output, shape index: {}]  }
   0x1   :  { %8 = vsyncpa [#allocation6], 0 }
   0x2   :  { %9 = vsyncpa [#allocation4], 0  ;;  %s14_s11 = sshll.u32 %s2660_s0, 4  ;;  %s2023_s12 = smov [#allocation2]   ;;  %s15_s11 = int_to_ptr.hbm [resolvable:$true] %s14_s11 }
   0x3   :  { %s16_s13 = sshll.u32 %s2023_s12, 4  ;;  %s28_s16 = sshll.u32 %s2661_s1, 4  ;;  %s17_s13 = int_to_ptr.vmem [resolvable:$true] %s16_s13  ;;  %s29_s16 = int_to_ptr.hbm [resolvable:$true] %s28_s16 }
   0x4   :  { %s2024_s17 = smov 256   ;;  %s2025_s18 = smov 16  }
   0x5   :  { %22 = dma.hbm_to_vmem [thread:$0]  %s15_s11, 8192, %s17_s13, [#allocation3], %s2024_s17, %s2024_s17, %s2025_s18  }
   0x6   :  { %s2026_s19 = smov [#allocation5]  }
   0x7   :  { %s30_s20 = sshll.u32 %s2026_s19, 4  ;;  %s31_s20 = int_to_ptr.vmem [resolvable:$true] %s30_s20 }
   0x8   :  { %33 = dma.hbm_to_vmem [thread:$0]  %s29_s16, 32, %s31_s20, [#allocation6]  }
   0x9   :  { %2017 = dma.done.wait [#allocation3], 8192  }
   0xa   :  { %2018 = vsyncadd [#allocation3], 4294959104 }
   0xb   :  { %2019 = dma.done.wait [#allocation6], 32  }
   0xc   :  { %2020 = vsyncadd [#allocation6], 4294967264  ;;  %v2053_v0 = vld [vmem:[#allocation2 + $0x40] sm:$0xff]  ;;  %v2055_v1 = vld [vmem:[#allocation2 + $0x48] sm:$0xff]  ;;  %s2028_s0 = smov [#allocation7]   ;;  %s1309_s23 = sshll.u32 %s2662_s2, 4  ;;  %s1310_s23 = int_to_ptr.hbm [resolvable:$true] %s1309_s23 }
   0xd   :  { %v2057_v2 = vld [vmem:[#allocation2 + $0x20] sm:$0xff]  ;;  %v114_v3 = vmul.f32 %v2053_v0, %v2053_v0  ;;  %v115_v4 = vmul.f32 %v2055_v1, %v2055_v1  ;;  %v2063_v5 = vld [vmem:[#allocation2 + $0x28] sm:$0xff]  ;;  %v2077_v12 = vld [vmem:[#allocation2 + $0x50] sm:$0xff]  ;;  %s1307_s1 = sshll.u32 %s2028_s0, 4  ;;  %s1308_s1 = int_to_ptr.vmem [resolvable:$true] %s1307_s1 }
   0xe   :  { %v110_v6 = vmul.f32 %v2057_v2, %v2057_v2  ;;  %v2067_v7 = vld [vmem:[#allocation2] sm:$0xff]  ;;  %v2069_v8 = vld [vmem:[#allocation2 + $0x8] sm:$0xff]  ;;  %v111_v9 = vmul.f32 %v2063_v5, %v2063_v5  ;;  %v2079_v13 = vld [vmem:[#allocation2 + $0x58] sm:$0xff]  ;;  %v116_v21 = vmul.f32 %v2077_v12, %v2077_v12 }
   0xf   :  { %v106_v10 = vmul.f32 %v2067_v7, %v2067_v7  ;;  %v107_v11 = vmul.f32 %v2069_v8, %v2069_v8  ;;  %v2081_v14 = vld [vmem:[#allocation2 + $0x30] sm:$0xff]  ;;  %v182_v15 = vadd.f32 %v115_v4, %v114_v3  ;;  %v2083_v16 = vld [vmem:[#allocation2 + $0x38] sm:$0xff]  ;;  %v117_v22 = vmul.f32 %v2079_v13, %v2079_v13  ;;  %v2101_v30 = vld [vmem:[#allocation2 + $0x80] sm:$0xff] }
  0x10   :  { %v2085_v17 = vld [vmem:[#allocation2 + $0x10] sm:$0xff]  ;;  %v2087_v18 = vld [vmem:[#allocation2 + $0x18] sm:$0xff]  ;;  %v176_v19 = vadd.f32 %v111_v9, %v110_v6  ;;  %v112_v23 = vmul.f32 %v2081_v14, %v2081_v14  ;;  %v113_v24 = vmul.f32 %v2083_v16, %v2083_v16  ;;  %v2103_v31 = vld [vmem:[#allocation2 + $0x88] sm:$0xff]  ;;  %v122_v36 = vmul.f32 %v2101_v30, %v2101_v30 }
  0x11   :  { %v170_v20 = vadd.f32 %v107_v11, %v106_v10  ;;  %183 = vadd.xlane.f32.xlu2 %v182_v15  ;;  %v108_v25 = vmul.f32 %v2085_v17, %v2085_v17  ;;  %v109_v26 = vmul.f32 %v2087_v18, %v2087_v18  ;;  %v185_v27 = vadd.f32 %v117_v22, %v116_v21  ;;  %v2105_v32 = vld [vmem:[#allocation2 + $0x70] sm:$0xff]  ;;  %v2107_v33 = vld [vmem:[#allocation2 + $0x78] sm:$0xff]  ;;  %v2109_v34 = vld [vmem:[#allocation2 + $0x60] sm:$0xff] }
  0x12   :  { %177 = vadd.xlane.f32.xlu1 %v176_v19  ;;  %v179_v28 = vadd.f32 %v113_v24, %v112_v23  ;;  %v2111_v35 = vld [vmem:[#allocation2 + $0x68] sm:$0xff]  ;;  %v123_v37 = vmul.f32 %v2103_v31, %v2103_v31  ;;  %v120_v38 = vmul.f32 %v2105_v32, %v2105_v32  ;;  %v121_v39 = vmul.f32 %v2107_v33, %v2107_v33  ;;  %v2125_v45 = vld [vmem:[#allocation2 + $0xb0] sm:$0xff]  ;;  %v2127_v46 = vld [vmem:[#allocation2 + $0xb8] sm:$0xff] }
  0x13   :  { %171 = vadd.xlane.f32.xlu0 %v170_v20  ;;  %v173_v29 = vadd.f32 %v109_v26, %v108_v25  ;;  %v118_v40 = vmul.f32 %v2109_v34, %v2109_v34  ;;  %v119_v41 = vmul.f32 %v2111_v35, %v2111_v35  ;;  %v2129_v47 = vld [vmem:[#allocation2 + $0xa0] sm:$0xff]  ;;  %v2131_v48 = vld [vmem:[#allocation2 + $0xa8] sm:$0xff]  ;;  %v2133_v49 = vld [vmem:[#allocation2 + $0x90] sm:$0xff]  ;;  %v128_v51 = vmul.f32 %v2125_v45, %v2125_v45 }
  0x14   :  { %v194_v42 = vadd.f32 %v123_v37, %v122_v36  ;;  %v191_v43 = vadd.f32 %v121_v39, %v120_v38  ;;  %v2135_v50 = vld [vmem:[#allocation2 + $0x98] sm:$0xff]  ;;  %v129_v52 = vmul.f32 %v2127_v46, %v2127_v46  ;;  %v126_v53 = vmul.f32 %v2129_v47, %v2129_v47  ;;  %v2149_v60 = vld [vmem:[#allocation2 + $0xe0] sm:$0xff]  ;;  %v2151_v61 = vld [vmem:[#allocation2 + $0xe8] sm:$0xff] }
  0x15   :  { %v188_v44 = vadd.f32 %v119_v41, %v118_v40  ;;  %v127_v54 = vmul.f32 %v2131_v48, %v2131_v48  ;;  %v124_v55 = vmul.f32 %v2133_v49, %v2133_v49  ;;  %v125_v56 = vmul.f32 %v2135_v50, %v2135_v50  ;;  %v68_v62 = vld [vmem:[#allocation2 + $0xd0] sm:$0xff]  ;;  %v69_v63 = vld [vmem:[#allocation2 + $0xd8] sm:$0xff]  ;;  %v66_v3 = vld [vmem:[#allocation2 + $0xc0] sm:$0xff] }
  0x16   :  { %v203_v57 = vadd.f32 %v129_v52, %v128_v51  ;;  %v67_v4 = vld [vmem:[#allocation2 + $0xc8] sm:$0xff]  ;;  %v134_v6 = vmul.f32 %v2149_v60, %v2149_v60  ;;  %v135_v9 = vmul.f32 %v2151_v61, %v2151_v61  ;;  %v132_v10 = vmul.f32 %v68_v62, %v68_v62  ;;  %v76_v23 = vld [vmem:[#allocation2 + $0x110] sm:$0xff]  ;;  %v77_v24 = vld [vmem:[#allocation2 + $0x118] sm:$0xff] }
  0x17   :  { %v200_v58 = vadd.f32 %v127_v54, %v126_v53  ;;  %v197_v59 = vadd.f32 %v125_v56, %v124_v55  ;;  %v133_v11 = vmul.f32 %v69_v63, %v69_v63  ;;  %v130_v15 = vmul.f32 %v66_v3, %v66_v3  ;;  %v74_v25 = vld [vmem:[#allocation2 + $0x100] sm:$0xff]  ;;  %v75_v26 = vld [vmem:[#allocation2 + $0x108] sm:$0xff]  ;;  %v80_v52 = vld [vmem:[#allocation2 + $0x130] sm:$0xff] }
  0x18   :  { %v131_v19 = vmul.f32 %v67_v4, %v67_v4  ;;  %v212_v20 = vadd.f32 %v135_v9, %v134_v6  ;;  %v141_v36 = vmul.f32 %v77_v24, %v77_v24  ;;  %v138_v37 = vmul.f32 %v74_v25, %v74_v25  ;;  %v83_v51 = vld [vmem:[#allocation2 + $0x148] sm:$0xff]  ;;  %v81_v53 = vld [vmem:[#allocation2 + $0x138] sm:$0xff]  ;;  %v78_v54 = vld [vmem:[#allocation2 + $0x120] sm:$0xff] }
  0x19   :  { %186 = vadd.xlane.f32.xlu2 %v185_v27  ;;  %v209_v21 = vadd.f32 %v133_v11, %v132_v10  ;;  %v72_v27 = vld [vmem:[#allocation2 + $0xf0] sm:$0xff]  ;;  %v139_v38 = vmul.f32 %v75_v26, %v75_v26  ;;  %v79_v55 = vld [vmem:[#allocation2 + $0x128] sm:$0xff]  ;;  %v142_v62 = vmul.f32 %v78_v54, %v78_v54  ;;  %v89_v10 = vld [vmem:[#allocation2 + $0x178] sm:$0xff] }
  0x1a   :  { %180 = vadd.xlane.f32.xlu1 %v179_v28  ;;  %v206_v22 = vadd.f32 %v131_v19, %v130_v15  ;;  %v73_v28 = vld [vmem:[#allocation2 + $0xf8] sm:$0xff]  ;;  %v136_v39 = vmul.f32 %v72_v27, %v72_v27  ;;  %v143_v63 = vmul.f32 %v79_v55, %v79_v55  ;;  %v88_v9 = vld [vmem:[#allocation2 + $0x170] sm:$0xff]  ;;  %v86_v11 = vld [vmem:[#allocation2 + $0x160] sm:$0xff] }
  0x1b   :  { %174 = vadd.xlane.f32.xlu0 %v173_v29  ;;  %v140_v29 = vmul.f32 %v76_v23, %v76_v23  ;;  %v137_v40 = vmul.f32 %v73_v28, %v73_v28  ;;  %v87_v15 = vld [vmem:[#allocation2 + $0x168] sm:$0xff]  ;;  %v84_v19 = vld [vmem:[#allocation2 + $0x150] sm:$0xff]  ;;  %v150_v23 = vmul.f32 %v86_v11, %v86_v11 }
  0x1c   :  { %v224_v6 = vadd.f32 %v143_v63, %v142_v62  ;;  %v151_v24 = vmul.f32 %v87_v15, %v87_v15  ;;  %v148_v25 = vmul.f32 %v84_v19, %v84_v19  ;;  %v99_v62 = vld [vmem:[#allocation2 + $0x1c8] sm:$0xff]  ;;  %v96_v63 = vld [vmem:[#allocation2 + $0x1b0] sm:$0xff] }
  0x1d   :  { %v221_v41 = vadd.f32 %v141_v36, %v140_v29  ;;  %v94_v36 = vld [vmem:[#allocation2 + $0x1a0] sm:$0xff]  ;;  %v160_v11 = vmul.f32 %v96_v63, %v96_v63 }
  0x1e   :  { %v236_v28 = vadd.f32 %v151_v24, %v150_v23  ;;  %v105_v23 = vld [vmem:[#allocation2 + $0x1f8] sm:$0xff]  ;;  %v102_v24 = vld [vmem:[#allocation2 + $0x1e0] sm:$0xff] }
  0x21   :  { %195 = vadd.xlane.f32.xlu2 %v194_v42  ;;  %v218_v42 = vadd.f32 %v139_v38, %v138_v37  ;;  %v95_v37 = vld [vmem:[#allocation2 + $0x1a8] sm:$0xff]  ;;  %v92_v38 = vld [vmem:[#allocation2 + $0x190] sm:$0xff] }
  0x22   :  { %192 = vadd.xlane.f32.xlu1 %v191_v43  ;;  %v215_v43 = vadd.f32 %v137_v40, %v136_v39  ;;  %v93_v39 = vld [vmem:[#allocation2 + $0x198] sm:$0xff]  ;;  %v90_v40 = vld [vmem:[#allocation2 + $0x180] sm:$0xff] }
  0x23   :  { %189 = vadd.xlane.f32.xlu0 %v188_v44  ;;  %v82_v44 = vld [vmem:[#allocation2 + $0x140] sm:$0xff] }
  0x24   :  { %v146_v56 = vmul.f32 %v82_v44, %v82_v44  ;;  %v156_v44 = vmul.f32 %v92_v38, %v92_v38  ;;  %v2027_v38 = vmov 256.0  }
  0x25   :  { %1841 = vrcp.f32 %v2027_v38 }
  0x29   :  { %204 = vadd.xlane.f32.xlu2 %v203_v57  ;;  %v147_v57 = vmul.f32 %v83_v51, %v83_v51  ;;  %v157_v51 = vmul.f32 %v93_v39, %v93_v39 }
  0x2a   :  { %201 = vadd.xlane.f32.xlu1 %v200_v58  ;;  %v144_v58 = vmul.f32 %v80_v52, %v80_v52  ;;  %v154_v52 = vmul.f32 %v90_v40, %v90_v40 }
  0x2b   :  { %198 = vadd.xlane.f32.xlu0 %v197_v59  ;;  %v145_v59 = vmul.f32 %v81_v53, %v81_v53  ;;  %v230_v3 = vadd.f32 %v147_v57, %v146_v56  ;;  %v245_v55 = vadd.f32 %v157_v51, %v156_v44  ;;  %v100_v57 = vld [vmem:[#allocation2 + $0x1d0] sm:$0xff]  ;;  %v1842_v39 = vpop.eup %1841 }
  0x2c   :  { %v267_v40 = vmul.f32 256.0, %v1842_v39  ;;  %vm271_vm0 = vweird.f32 %v1842_v39 }
  0x2d   :  { %v227_v4 = vadd.f32 %v145_v59, %v144_v58  ;;  %v101_v58 = vld [vmem:[#allocation2 + $0x1d8] sm:$0xff]  ;;  %v98_v59 = vld [vmem:[#allocation2 + $0x1c0] sm:$0xff] }
  0x31   :  { %213 = vadd.xlane.f32.xlu2 %v212_v20  ;;  %v85_v20 = vld [vmem:[#allocation2 + $0x158] sm:$0xff] }
  0x32   :  { %210 = vadd.xlane.f32.xlu1 %v209_v21  ;;  %v152_v21 = vmul.f32 %v88_v9, %v88_v9  ;;  %v149_v26 = vmul.f32 %v85_v20, %v85_v20  ;;  %v162_v9 = vmul.f32 %v98_v59, %v98_v59 }
  0x33   :  { %207 = vadd.xlane.f32.xlu0 %v206_v22  ;;  %v153_v22 = vmul.f32 %v89_v10, %v89_v10  ;;  %v163_v10 = vmul.f32 %v99_v62, %v99_v62 }
  0x34   :  { %v233_v29 = vadd.f32 %v149_v26, %v148_v25  ;;  %v103_v25 = vld [vmem:[#allocation2 + $0x1e8] sm:$0xff] }
  0x35   :  { %v239_v27 = vadd.f32 %v153_v22, %v152_v21  ;;  %v254_v20 = vadd.f32 %v163_v10, %v162_v9  ;;  %v104_v22 = vld [vmem:[#allocation2 + $0x1f0] sm:$0xff] }
  0x36   :  { %v168_v26 = vmul.f32 %v104_v22, %v104_v22 }
  0x39   :  { %222 = vadd.xlane.f32.xlu2 %v221_v41  ;;  %v91_v41 = vld [vmem:[#allocation2 + $0x188] sm:$0xff] }
  0x3a   :  { %219 = vadd.xlane.f32.xlu1 %v218_v42  ;;  %v158_v42 = vmul.f32 %v94_v36, %v94_v36  ;;  %v155_v53 = vmul.f32 %v91_v41, %v91_v41  ;;  %v268_v41 = vsub.f32 1.0, %v267_v40 }
  0x3b   :  { %216 = vadd.xlane.f32.xlu0 %v215_v43  ;;  %v159_v43 = vmul.f32 %v95_v37, %v95_v37 }
  0x3c   :  { %v242_v56 = vadd.f32 %v155_v53, %v154_v52 }
  0x3d   :  { %v248_v54 = vadd.f32 %v159_v43, %v158_v42  ;;  %v269_v42 = vmul.f32 %v1842_v39, %v268_v41 }
  0x3f   :  { %v270_v43 = vadd.f32 %v1842_v39, %v269_v42 }
  0x41   :  { %231 = vadd.xlane.f32.xlu2 %v230_v3  ;;  %v97_v3 = vld [vmem:[#allocation2 + $0x1b8] sm:$0xff]  ;;  %v2157_v44 = vsel %vm271_vm0, %v1842_v39, %v270_v43 }
  0x42   :  { %228 = vadd.xlane.f32.xlu1 %v227_v4  ;;  %v164_v4 = vmul.f32 %v100_v57, %v100_v57  ;;  %v161_v15 = vmul.f32 %v97_v3, %v97_v3 }
  0x43   :  { %225 = vadd.xlane.f32.xlu0 %v224_v6  ;;  %v165_v6 = vmul.f32 %v101_v58, %v101_v58 }
  0x44   :  { %v251_v21 = vadd.f32 %v161_v15, %v160_v11 }
  0x45   :  { %v257_v19 = vadd.f32 %v165_v6, %v164_v4 }
  0x49   :  { %240 = vadd.xlane.f32.xlu2 %v239_v27  ;;  %v169_v27 = vmul.f32 %v105_v23, %v105_v23 }
  0x4a   :  { %237 = vadd.xlane.f32.xlu1 %v236_v28  ;;  %v166_v28 = vmul.f32 %v102_v24, %v102_v24 }
  0x4b   :  { %234 = vadd.xlane.f32.xlu0 %v233_v29  ;;  %v167_v29 = vmul.f32 %v103_v25, %v103_v25  ;;  %v263_v36 = vadd.f32 %v169_v27, %v168_v26 }
  0x4d   :  { %v260_v37 = vadd.f32 %v167_v29, %v166_v28 }
  0x51   :  { %249 = vadd.xlane.f32.xlu2 %v248_v54 }
  0x52   :  { %246 = vadd.xlane.f32.xlu1 %v245_v55 }
  0x53   :  { %243 = vadd.xlane.f32.xlu0 %v242_v56 }
  0x59   :  { %258 = vadd.xlane.f32.xlu2 %v257_v19 }
  0x5a   :  { %255 = vadd.xlane.f32.xlu1 %v254_v20 }
  0x5b   :  { %252 = vadd.xlane.f32.xlu0 %v251_v21  ;;  %v721_v21 = vld [vmem:[#allocation5] sm:$0x3] }
  0x5c   :  { %v2171_v27 = vperm.slane %v721_v21, 0  ;;  %v2173_v28 = vperm.slane %v721_v21, 1 }
  0x62   :  { %264 = vadd.xlane.f32.xlu1 %v263_v36 }
  0x63   :  { %261 = vadd.xlane.f32.xlu0 %v260_v37 }
  0x84   :  { %v184_v51 = vpop.xlane.xlu2 %183 }
  0x85   :  { %v277_v52 = vmul.f32 %v2157_v44, %v184_v51  ;;  %v178_v53 = vpop.xlane.xlu1 %177 }
  0x86   :  { %v172_v54 = vpop.xlane.xlu0 %171  ;;  %v275_v55 = vmul.f32 %v2157_v44, %v178_v53 }
  0x87   :  { %v273_v56 = vmul.f32 %v2157_v44, %v172_v54  ;;  %v309_v57 = vadd.f32 1e-06, %v277_v52 }
  0x88   :  { %v307_v58 = vadd.f32 1e-06, %v275_v55 }
  0x89   :  { %v305_v59 = vadd.f32 1e-06, %v273_v56  ;;  %1843 = vrsqrt.f32 %v309_v57  ;;  %vm383_vm1 = vweird.f32 %v309_v57 }
  0x8a   :  { %1845 = vrsqrt.f32 %v307_v58  ;;  %vm363_vm3 = vweird.f32 %v307_v58 }
  0x8b   :  { %1847 = vrsqrt.f32 %v305_v59  ;;  %vm343_vm5 = vweird.f32 %v305_v59 }
  0x8c   :  { %v187_v62 = vpop.xlane.xlu2 %186 }
  0x8d   :  { %v278_v63 = vmul.f32 %v2157_v44, %v187_v62  ;;  %v181_v3 = vpop.xlane.xlu1 %180 }
  0x8e   :  { %v276_v4 = vmul.f32 %v2157_v44, %v181_v3  ;;  %v175_v6 = vpop.xlane.xlu0 %174 }
  0x8f   :  { %v1844_v9 = vpop.eup %1843  ;;  %v2164_v10 = vadd.f32 1e-06, %v278_v63  ;;  %v274_v23 = vmul.f32 %v2157_v44, %v175_v6 }
  0x90   :  { %v1846_v11 = vpop.eup %1845  ;;  %v378_v15 = vmul.f32 %v1844_v9, %v309_v57  ;;  %v2166_v19 = vadd.f32 1e-06, %v276_v4  ;;  %vm384_vm2 = vweird.f32 %v1844_v9 }
  0x91   :  { %v1848_v20 = vpop.eup %1847  ;;  %v358_v22 = vmul.f32 %v1846_v11, %v307_v58  ;;  %1849 = vrsqrt.f32 %v2164_v10  ;;  %v2175_v39 = vadd.f32 1e-06, %v274_v23  ;;  %vm364_vm4 = vweird.f32 %v1846_v11  ;;  %vm385_vm8 = vmor %vm383_vm1, %vm384_vm2 }
  0x92   :  { %v379_v24 = vmul.f32 %v1844_v9, %v378_v15  ;;  %v338_v25 = vmul.f32 %v1848_v20, %v305_v59  ;;  %1851 = vrsqrt.f32 %v2166_v19  ;;  %vm393_vm6 = vweird.f32 %v2164_v10  ;;  %vm365_vm9 = vmor %vm363_vm3, %vm364_vm4 }
  0x93   :  { %v359_v26 = vmul.f32 %v1846_v11, %v358_v22  ;;  %vm344_vm7 = vweird.f32 %v1848_v20  ;;  %1853 = vrsqrt.f32 %v2175_v39  ;;  %vm373_vm14 = vweird.f32 %v2166_v19 }
  0x94   :  { %v380_v29 = vmul.f32 0.5, %v379_v24  ;;  %v339_v36 = vmul.f32 %v1848_v20, %v338_v25  ;;  %v196_v37 = vpop.xlane.xlu2 %195  ;;  %vm345_vm11 = vmor %vm343_vm5, %vm344_vm7  ;;  %vm353_vm15 = vweird.f32 %v2175_v39 }
  0x95   :  { %v360_v38 = vmul.f32 0.5, %v359_v26  ;;  %v281_v40 = vmul.f32 %v2157_v44, %v196_v37 }
  0x96   :  { %v381_v41 = vsub.f32 1.5, %v380_v29  ;;  %v340_v42 = vmul.f32 0.5, %v339_v36 }
  0x97   :  { %v1850_v43 = vpop.eup %1849  ;;  %v361_v51 = vsub.f32 1.5, %v360_v38  ;;  %v2186_v63 = vadd.f32 1e-06, %v281_v40 }
  0x98   :  { %v2179_v52 = vpop.eup %1851  ;;  %v382_v53 = vmul.f32 %v1844_v9, %v381_v41  ;;  %v341_v54 = vsub.f32 1.5, %v340_v42  ;;  %v388_v55 = vmul.f32 %v1850_v43, %v2164_v10  ;;  %vm394_vm10 = vweird.f32 %v1850_v43 }
  0x99   :  { %v362_v56 = vmul.f32 %v1846_v11, %v361_v51  ;;  %v368_v62 = vmul.f32 %v2179_v52, %v2166_v19  ;;  %v2202_v37 = vpop.eup %1853  ;;  %1855 = vrsqrt.f32 %v2186_v63  ;;  %vm395_vm12 = vmor %vm393_vm6, %vm394_vm10  ;;  %vm374_vm13 = vweird.f32 %v2179_v52 }
  0x9a   :  { %v386_v3 = vsel %vm385_vm8, %v1844_v9, %v382_v53  ;;  %v342_v4 = vmul.f32 %v1848_v20, %v341_v54  ;;  %v389_v6 = vmul.f32 %v1850_v43, %v388_v55  ;;  %v193_v53 = vpop.xlane.xlu1 %192  ;;  %v190_v54 = vpop.xlane.xlu0 %189  ;;  %vm375_vm0 = vmor %vm373_vm14, %vm374_vm13  ;;  %vm354_vm1 = vweird.f32 %v2202_v37 }
  0x9b   :  { %v665_v15 = vmul.f32 %v386_v3, %v2053_v0  ;;  %v666_v21 = vmul.f32 %v386_v3, %v2055_v1  ;;  %v366_v57 = vsel %vm365_vm9, %v1846_v11, %v362_v56  ;;  %v369_v22 = vmul.f32 %v2179_v52, %v368_v62  ;;  %vm355_vm2 = vmor %vm353_vm15, %vm354_vm1 }
  0x9c   :  { %v661_v23 = vmul.f32 %v366_v57, %v2057_v2  ;;  %v662_v24 = vmul.f32 %v366_v57, %v2063_v5  ;;  %v346_v9 = vsel %vm345_vm11, %v1848_v20, %v342_v4  ;;  %v390_v58 = vmul.f32 0.5, %v389_v6 }
  0x9d   :  { %v735_v25 = vmul.f32 %v2171_v27, %v665_v15  ;;  %v736_v26 = vmul.f32 %v2173_v28, %v666_v21  ;;  %v657_v0 = vmul.f32 %v346_v9, %v2067_v7  ;;  %v658_v1 = vmul.f32 %v346_v9, %v2069_v8 }
  0x9e   :  { %v731_v11 = vmul.f32 %v2171_v27, %v661_v23  ;;  %v732_v59 = vmul.f32 %v2173_v28, %v662_v24  ;;  %v391_v29 = vsub.f32 1.5, %v390_v58  ;;  %v370_v36 = vmul.f32 0.5, %v369_v22 }
  0x9f   :  { %v799_v2 = vmul.f32 20.0, %v735_v25  ;;  %v800_v5 = vmul.f32 20.0, %v736_v26  ;;  %v727_v20 = vmul.f32 %v2171_v27, %v657_v0  ;;  %v728_v7 = vmul.f32 %v2173_v28, %v658_v1  ;;  %v2220_v57 = vpop.eup %1855 }
  0xa0   :  { %v392_v38 = vmul.f32 %v1850_v43, %v391_v29  ;;  %v371_v40 = vsub.f32 1.5, %v370_v36  ;;  %v795_v41 = vmul.f32 20.0, %v731_v11  ;;  %v796_v42 = vmul.f32 20.0, %v732_v59 }
  0xa1   :  { %v1475_v8 = vmax.f32 %v799_v2, -128.0  ;;  %v1478_v55 = vmax.f32 %v800_v5, -128.0  ;;  %v791_v56 = vmul.f32 20.0, %v727_v20  ;;  %v348_v3 = vmul.f32 %v2202_v37, %v2175_v39 }
  0xa2   :  { %v396_v51 = vsel %vm395_vm12, %v1850_v43, %v392_v38  ;;  %v372_v62 = vmul.f32 %v2179_v52, %v371_v40  ;;  %v1463_v10 = vmax.f32 %v795_v41, -128.0  ;;  %v792_v15 = vmul.f32 20.0, %v728_v7 }
  0xa3   :  { %v667_v4 = vmul.f32 %v396_v51, %v2077_v12  ;;  %v668_v6 = vmul.f32 %v396_v51, %v2079_v13  ;;  %v280_v43 = vmul.f32 %v2157_v44, %v193_v53  ;;  %v279_v21 = vmul.f32 %v2157_v44, %v190_v54 }
  0xa4   :  { %v2222_v22 = vmin.f32 %v1475_v8, 127.0  ;;  %v1466_v23 = vmax.f32 %v796_v42, -128.0  ;;  %v2228_v13 = vmin.f32 %v1478_v55, 127.0  ;;  %v1451_v19 = vmax.f32 %v791_v56, -128.0  ;;  %v205_v42 = vpop.xlane.xlu2 %204 }
  0xa5   :  { %v737_v24 = vmul.f32 %v2171_v27, %v667_v4  ;;  %v738_v12 = vmul.f32 %v2173_v28, %v668_v6  ;;  %v376_v9 = vsel %vm375_vm0, %v2179_v52, %v372_v62  ;;  %v349_v58 = vmul.f32 %v2202_v37, %v348_v3 }
  0xa6   :  { %v663_v0 = vmul.f32 %v376_v9, %v2081_v14  ;;  %v664_v1 = vmul.f32 %v376_v9, %v2083_v16  ;;  %v2234_v11 = vmin.f32 %v1463_v10, 127.0  ;;  %v1454_v59 = vmax.f32 %v792_v15, -128.0 }
  0xa7   :  { %v801_v25 = vmul.f32 20.0, %v737_v24  ;;  %v802_v26 = vmul.f32 20.0, %v738_v12  ;;  %v350_v29 = vmul.f32 0.5, %v349_v58  ;;  %v418_v36 = vmul.f32 %v2220_v57, %v2186_v63 }
  0xa8   :  { %v2238_v2 = vmin.f32 %v1466_v23, 127.0  ;;  %v733_v52 = vmul.f32 %v2171_v27, %v663_v0  ;;  %v734_v20 = vmul.f32 %v2173_v28, %v664_v1  ;;  %v2244_v16 = vadd.f32 1e-06, %v280_v43  ;;  %v202_v23 = vpop.xlane.xlu1 %201 }
  0xa9   :  { %v1481_v5 = vmax.f32 %v801_v25, -128.0  ;;  %v351_v38 = vsub.f32 1.5, %v350_v29  ;;  %v419_v14 = vmul.f32 %v2220_v57, %v418_v36  ;;  %v1669_v40 = vcvt.f32.s32 %v2222_v22 }
  0xaa   :  { %v1484_v41 = vmax.f32 %v802_v26, -128.0  ;;  %v797_v7 = vmul.f32 20.0, %v733_v52  ;;  %v798_v8 = vmul.f32 20.0, %v734_v20  ;;  %v1672_v51 = vcvt.f32.s32 %v2228_v13 }
  0xab   :  { %v352_v53 = vmul.f32 %v2202_v37, %v351_v38  ;;  %v420_v54 = vmul.f32 0.5, %v419_v14  ;;  %1857 = vrsqrt.f32 %v2244_v16  ;;  %v2250_v55 = vmin.f32 %v1451_v19, 127.0 }
  0xac   :  { %v1482_v56 = vmin.f32 %v1481_v5, 127.0  ;;  %v1469_v62 = vmax.f32 %v797_v7, -128.0  ;;  %v1472_v3 = vmax.f32 %v798_v8, -128.0  ;;  %v2257_v10 = vadd.f32 1e-06, %v279_v21 }
  0xad   :  { %v356_v4 = vsel %vm355_vm2, %v2202_v37, %v352_v53  ;;  %v421_v6 = vsub.f32 1.5, %v420_v54  ;;  %v284_v15 = vmul.f32 %v2157_v44, %v205_v42  ;;  %v1455_v43 = vmin.f32 %v1454_v59, 127.0 }
  0xae   :  { %v1485_v22 = vmin.f32 %v1484_v41, 127.0  ;;  %vm423_vm3 = vweird.f32 %v2186_v63  ;;  %vm424_vm4 = vweird.f32 %v2220_v57  ;;  %v659_v24 = vmul.f32 %v356_v4, %v2085_v17 }
  0xaf   :  { %v660_v12 = vmul.f32 %v356_v4, %v2087_v18  ;;  %v422_v39 = vmul.f32 %v2220_v57, %v421_v6  ;;  %1859 = vrsqrt.f32 %v2257_v10  ;;  %v1675_v37 = vcvt.f32.s32 %v1482_v56  ;;  %vm425_vm5 = vmor %vm423_vm3, %vm424_vm4  ;;  %v214_v56 = vpop.xlane.xlu2 %213 }
  0xb0   :  { %v1470_v21 = vmin.f32 %v1469_v62, 127.0  ;;  %v1473_v13 = vmin.f32 %v1472_v3, 127.0  ;;  %v2266_v19 = vadd.f32 1e-06, %v284_v15  ;;  %v1657_v58 = vcvt.f32.s32 %v2234_v11 }
  0xb1   :  { %v1858_v9 = vpop.eup %1857  ;;  %v729_v25 = vmul.f32 %v2171_v27, %v659_v24  ;;  %v730_v26 = vmul.f32 %v2173_v28, %v660_v12  ;;  %v283_v17 = vmul.f32 %v2157_v44, %v202_v23  ;;  %v1660_v18 = vcvt.f32.s32 %v2238_v2 }
  0xb2   :  { %v1645_v0 = vcvt.f32.s32 %v2250_v55  ;;  %v1648_v1 = vcvt.f32.s32 %v1455_v43  ;;  %v1678_v59 = vcvt.f32.s32 %v1485_v22  ;;  %v426_v11 = vsel %vm425_vm5, %v2220_v57, %v422_v39  ;;  %v199_v55 = vpop.xlane.xlu0 %198 }
  0xb3   :  { %v793_v29 = vmul.f32 20.0, %v729_v25  ;;  %v794_v36 = vmul.f32 20.0, %v730_v26  ;;  %v408_v5 = vmul.f32 %v1858_v9, %v2244_v16  ;;  %vm413_vm6 = vweird.f32 %v2244_v16 }
  0xb4   :  { %v2281_v52 = vpack.c.b16 %v1675_v37, %v1669_v40  ;;  %v1663_v2 = vcvt.f32.s32 %v1470_v21  ;;  %v1666_v20 = vcvt.f32.s32 %v1473_v13  ;;  %1861 = vrsqrt.f32 %v2266_v19 }
  0xb5   :  { %v1860_v38 = vpop.eup %1859  ;;  %v1457_v14 = vmax.f32 %v793_v29, -128.0  ;;  %v1460_v41 = vmax.f32 %v794_v36, -128.0  ;;  %v409_v7 = vmul.f32 %v1858_v9, %v408_v5  ;;  %v2284_v63 = vadd.f32 1e-06, %v283_v17 }
  0xb6   :  { %v2286_v8 = vpack.c.b16 %v1678_v59, %v1672_v51  ;;  %v673_v57 = vmul.f32 %v426_v11, %v2101_v30  ;;  %v398_v42 = vmul.f32 %v1860_v38, %v2257_v10  ;;  %vm403_vm7 = vweird.f32 %v2257_v10 }
  0xb7   :  { %v1458_v40 = vmin.f32 %v1457_v14, 127.0  ;;  %v1461_v53 = vmin.f32 %v1460_v41, 127.0  ;;  %v410_v54 = vmul.f32 0.5, %v409_v7  ;;  %1863 = vrsqrt.f32 %v2284_v63 }
  0xb8   :  { %v1240_v62 = vpack.c.b16 %v1663_v2, %v1657_v58  ;;  %v1243_v3 = vpack.c.b16 %v1666_v20, %v1660_v18  ;;  %v674_v4 = vmul.f32 %v426_v11, %v2103_v31  ;;  %v399_v6 = vmul.f32 %v1860_v38, %v398_v42 }
  0xb9   :  { %v1651_v51 = vcvt.f32.s32 %v1458_v40  ;;  %v1654_v15 = vcvt.f32.s32 %v1461_v53  ;;  %v411_v43 = vsub.f32 1.5, %v410_v54  ;;  %vm414_vm8 = vweird.f32 %v1858_v9 }
  0xba   :  { %v1862_v30 = vpop.eup %1861  ;;  %v743_v22 = vmul.f32 %v2171_v27, %v673_v57  ;;  %v400_v23 = vmul.f32 0.5, %v399_v6  ;;  %v282_v24 = vmul.f32 %v2157_v44, %v199_v55  ;;  %v287_v12 = vmul.f32 %v2157_v44, %v214_v56  ;;  %vm415_vm9 = vmor %vm413_vm6, %vm414_vm8 }
  0xbb   :  { %v1239_v39 = vpack.c.b16 %v1651_v51, %v1645_v0  ;;  %v1242_v37 = vpack.c.b16 %v1654_v15, %v1648_v1  ;;  %v412_v21 = vmul.f32 %v1858_v9, %v411_v43  ;;  %v448_v13 = vmul.f32 %v1862_v30, %v2266_v19 }
  0xbc   :  { %v2298_v31 = vmul.f32 %v2173_v28, %v674_v4  ;;  %v401_v58 = vsub.f32 1.5, %v400_v23  ;;  %vm404_vm10 = vweird.f32 %v1860_v38  ;;  %vm453_vm11 = vweird.f32 %v2266_v19 }
  0xbd   :  { %v1864_v25 = vpop.eup %1863  ;;  %v1241_v26 = vpack.c.b8 %v1240_v62, %v1239_v39  ;;  %v1244_v17 = vpack.c.b8 %v1243_v3, %v1242_v37  ;;  %v416_v18 = vsel %vm415_vm9, %v1858_v9, %v412_v21  ;;  %v449_v59 = vmul.f32 %v1862_v30, %v448_v13  ;;  %vm405_vm12 = vmor %vm403_vm7, %vm404_vm10 }
  0xbe   :  { %v671_v0 = vmul.f32 %v416_v18, %v2105_v32  ;;  %v672_v1 = vmul.f32 %v416_v18, %v2107_v33  ;;  %v402_v29 = vmul.f32 %v1860_v38, %v401_v58  ;;  %v438_v36 = vmul.f32 %v1864_v25, %v2284_v63 }
  0xbf   :  { %1287 = vst [vmem:[#allocation7] sm:$0xff] %v1241_v26  ;;  %v450_v16 = vmul.f32 0.5, %v449_v59  ;;  %vm454_vm13 = vweird.f32 %v1862_v30  ;;  %v2308_v11 = vadd.f32 1e-06, %v282_v24  ;;  %v2310_v5 = vadd.f32 1e-06, %v287_v12 }
  0xc0   :  { %1288 = vst [vmem:[#allocation7 + $0x8] sm:$0xff] %v1244_v17  ;;  %v741_v9 = vmul.f32 %v2171_v27, %v671_v0  ;;  %v742_v32 = vmul.f32 %v2173_v28, %v672_v1  ;;  %v406_v2 = vsel %vm405_vm12, %v1860_v38, %v402_v29  ;;  %v439_v33 = vmul.f32 %v1864_v25, %v438_v36  ;;  %vm455_vm15 = vmor %vm453_vm11, %vm454_vm13 }
  0xc1   :  { %v669_v20 = vmul.f32 %v406_v2, %v2109_v34  ;;  %v670_v14 = vmul.f32 %v406_v2, %v2111_v35  ;;  %v451_v41 = vsub.f32 1.5, %v450_v16  ;;  %1865 = vrsqrt.f32 %v2308_v11  ;;  %v211_v35 = vpop.xlane.xlu1 %210 }
  0xc2   :  { %v2317_v10 = vmul.f32 20.0, %v743_v22  ;;  %v805_v7 = vmul.f32 20.0, %v741_v9  ;;  %v806_v57 = vmul.f32 20.0, %v742_v32  ;;  %v440_v42 = vmul.f32 0.5, %v439_v33 }
  0xc3   :  { %v739_v40 = vmul.f32 %v2171_v27, %v669_v20  ;;  %v740_v53 = vmul.f32 %v2173_v28, %v670_v14  ;;  %v452_v54 = vmul.f32 %v1862_v30, %v451_v41  ;;  %vm443_vm14 = vweird.f32 %v2284_v63  ;;  %v208_v14 = vpop.xlane.xlu0 %207 }
  0xc4   :  { %v1493_v38 = vmax.f32 %v805_v7, -128.0  ;;  %v1496_v55 = vmax.f32 %v806_v57, -128.0  ;;  %v441_v34 = vsub.f32 1.5, %v440_v42  ;;  %1867 = vrsqrt.f32 %v2310_v5 }
  0xc5   :  { %v803_v56 = vmul.f32 20.0, %v739_v40  ;;  %v804_v62 = vmul.f32 20.0, %v740_v53  ;;  %v456_v3 = vsel %vm455_vm15, %v1862_v30, %v452_v54  ;;  %vm444_vm0 = vweird.f32 %v1864_v25  ;;  %v223_v54 = vpop.xlane.xlu2 %222 }
  0xc6   :  { %v1494_v4 = vmin.f32 %v1493_v38, 127.0  ;;  %v1497_v6 = vmin.f32 %v1496_v55, 127.0  ;;  %v679_v51 = vmul.f32 %v456_v3, %v2125_v45  ;;  %v680_v15 = vmul.f32 %v456_v3, %v2127_v46  ;;  %vm445_vm1 = vmor %vm443_vm14, %vm444_vm0 }
  0xc7   :  { %v1866_v43 = vpop.eup %1865  ;;  %v1487_v22 = vmax.f32 %v803_v56, -128.0  ;;  %v1490_v23 = vmax.f32 %v804_v62, -128.0  ;;  %v442_v24 = vmul.f32 %v1864_v25, %v441_v34  ;;  %v286_v19 = vmul.f32 %v2157_v44, %v211_v35 }
  0xc8   :  { %v1687_v12 = vcvt.f32.s32 %v1494_v4  ;;  %v1690_v39 = vcvt.f32.s32 %v1497_v6  ;;  %v749_v37 = vmul.f32 %v2171_v27, %v679_v51  ;;  %v750_v21 = vmul.f32 %v2173_v28, %v680_v15 }
  0xc9   :  { %v1488_v30 = vmin.f32 %v1487_v22, 127.0  ;;  %v1491_v13 = vmin.f32 %v1490_v23, 127.0  ;;  %v446_v45 = vsel %vm445_vm1, %v1864_v25, %v442_v24  ;;  %v428_v46 = vmul.f32 %v1866_v43, %v2308_v11  ;;  %v220_v38 = vpop.xlane.xlu1 %219 }
  0xca   :  { %v2334_v58 = vpop.eup %1867  ;;  %v808_v26 = vmul.f32 20.0, %v2298_v31  ;;  %v813_v17 = vmul.f32 20.0, %v749_v37  ;;  %v677_v18 = vmul.f32 %v446_v45, %v2129_v47  ;;  %v678_v59 = vmul.f32 %v446_v45, %v2131_v48 }
  0xcb   :  { %v1499_v0 = vmax.f32 %v2317_v10, -128.0  ;;  %v1681_v1 = vcvt.f32.s32 %v1488_v30  ;;  %v1684_v29 = vcvt.f32.s32 %v1491_v13  ;;  %v429_v63 = vmul.f32 %v1866_v43, %v428_v46 }
  0xcc   :  { %v814_v36 = vmul.f32 20.0, %v750_v21  ;;  %v747_v16 = vmul.f32 %v2171_v27, %v677_v18  ;;  %v748_v25 = vmul.f32 %v2173_v28, %v678_v59  ;;  %v2342_v9 = vadd.f32 1e-06, %v286_v19 }
  0xcd   :  { %v1246_v32 = vpack.c.b16 %v1687_v12, %v1681_v1  ;;  %v1249_v2 = vpack.c.b16 %v1690_v39, %v1684_v29  ;;  %v430_v31 = vmul.f32 0.5, %v429_v63  ;;  %v478_v47 = vmul.f32 %v2334_v58, %v2310_v5 }
  0xce   :  { %v1517_v33 = vmax.f32 %v813_v17, -128.0  ;;  %v811_v48 = vmul.f32 20.0, %v747_v16  ;;  %v812_v20 = vmul.f32 20.0, %v748_v25  ;;  %vm434_vm2 = vweird.f32 %v1866_v43  ;;  %v217_v17 = vpop.xlane.xlu0 %216  ;;  %v232_v25 = vpop.xlane.xlu2 %231 }
  0xcf   :  { %v1247_v41 = vpack.c.b8 %v1246_v32, %v2281_v52  ;;  %v1250_v10 = vpack.c.b8 %v1249_v2, %v2286_v8  ;;  %v431_v7 = vsub.f32 1.5, %v430_v31  ;;  %v479_v57 = vmul.f32 %v2334_v58, %v478_v47 }
  0xd0   :  { %v1502_v42 = vmax.f32 %v808_v26, -128.0  ;;  %v1520_v40 = vmax.f32 %v814_v36, -128.0  ;;  %v1511_v53 = vmax.f32 %v811_v48, -128.0  ;;  %vm433_vm3 = vweird.f32 %v2308_v11 }
  0xd1   :  { %1289 = vst [vmem:[#allocation7 + $0x10] sm:$0xff] %v1247_v41  ;;  %v1514_v55 = vmax.f32 %v812_v20, -128.0  ;;  %v432_v34 = vmul.f32 %v1866_v43, %v431_v7  ;;  %v480_v35 = vmul.f32 0.5, %v479_v57  ;;  %1869 = vrsqrt.f32 %v2342_v9  ;;  %vm435_vm4 = vmor %vm433_vm3, %vm434_vm2 }
  0xd2   :  { %1290 = vst [vmem:[#allocation7 + $0x18] sm:$0xff] %v1250_v10  ;;  %v1518_v52 = vmin.f32 %v1517_v33, 127.0  ;;  %vm483_vm5 = vweird.f32 %v2310_v5  ;;  %vm484_vm6 = vweird.f32 %v2334_v58  ;;  %v285_v8 = vmul.f32 %v2157_v44, %v208_v14 }
  0xd3   :  { %v436_v56 = vsel %vm435_vm4, %v1866_v43, %v432_v34  ;;  %v481_v11 = vsub.f32 1.5, %v480_v35  ;;  %v290_v62 = vmul.f32 %v2157_v44, %v223_v54  ;;  %v289_v3 = vmul.f32 %v2157_v44, %v220_v38  ;;  %vm485_vm7 = vmor %vm483_vm5, %vm484_vm6 }
  0xd4   :  { %v1521_v4 = vmin.f32 %v1520_v40, 127.0  ;;  %v1512_v6 = vmin.f32 %v1511_v53, 127.0  ;;  %v675_v51 = vmul.f32 %v436_v56, %v2133_v49  ;;  %v676_v15 = vmul.f32 %v436_v56, %v2135_v50 }
  0xd5   :  { %v1515_v22 = vmin.f32 %v1514_v55, 127.0  ;;  %v482_v23 = vmul.f32 %v2334_v58, %v481_v11  ;;  %v2360_v24 = vadd.f32 1e-06, %v285_v8  ;;  %v2362_v19 = vadd.f32 1e-06, %v290_v62 }
  0xd6   :  { %v1500_v12 = vmin.f32 %v1499_v0, 127.0  ;;  %v1503_v43 = vmin.f32 %v1502_v42, 127.0  ;;  %v745_v39 = vmul.f32 %v2171_v27, %v675_v51  ;;  %v746_v37 = vmul.f32 %v2173_v28, %v676_v15 }
  0xd7   :  { %v1870_v49 = vpop.eup %1869  ;;  %v1711_v50 = vcvt.f32.s32 %v1518_v52  ;;  %v486_v21 = vsel %vm485_vm7, %v2334_v58, %v482_v23  ;;  %1871 = vrsqrt.f32 %v2360_v24  ;;  %v2372_v30 = vadd.f32 1e-06, %v289_v3  ;;  %v229_v52 = vpop.xlane.xlu1 %228 }
  0xd8   :  { %v1714_v13 = vcvt.f32.s32 %v1521_v4  ;;  %v809_v45 = vmul.f32 20.0, %v745_v39  ;;  %v810_v46 = vmul.f32 20.0, %v746_v37  ;;  %v685_v26 = vmul.f32 %v486_v21, %v2149_v60 }
  0xd9   :  { %v1705_v18 = vcvt.f32.s32 %v1512_v6  ;;  %v1708_v59 = vcvt.f32.s32 %v1515_v22  ;;  %v468_v0 = vmul.f32 %v1870_v49, %v2342_v9  ;;  %1873 = vrsqrt.f32 %v2362_v19  ;;  %v1907_v22 = vld [vmem:[#allocation2 + $0xd0] sm:$0xff] }
  0xda   :  { %v1693_v5 = vcvt.f32.s32 %v1500_v12  ;;  %v1505_v1 = vmax.f32 %v809_v45, -128.0  ;;  %v1508_v29 = vmax.f32 %v810_v46, -128.0  ;;  %v686_v58 = vmul.f32 %v486_v21, %v2151_v61  ;;  %v1908_v12 = vld [vmem:[#allocation2 + $0xd8] sm:$0xff] }
  0xdb   :  { %v1696_v63 = vcvt.f32.s32 %v1503_v43  ;;  %v469_v36 = vmul.f32 %v1870_v49, %v468_v0  ;;  %1875 = vrsqrt.f32 %v2372_v30  ;;  %v288_v16 = vmul.f32 %v2157_v44, %v217_v17 }
  0xdc   :  { %v1506_v60 = vmin.f32 %v1505_v1, 127.0  ;;  %v1509_v32 = vmin.f32 %v1508_v29, 127.0  ;;  %v755_v2 = vmul.f32 %v2171_v27, %v685_v26  ;;  %vm473_vm8 = vweird.f32 %v2342_v9 }
  0xdd   :  { %v1872_v31 = vpop.eup %1871  ;;  %v1252_v47 = vpack.c.b16 %v1711_v50, %v1705_v18  ;;  %v1255_v33 = vpack.c.b16 %v1714_v13, %v1708_v59  ;;  %v470_v48 = vmul.f32 0.5, %v469_v36  ;;  %v2382_v20 = vadd.f32 1e-06, %v288_v16  ;;  %v1909_v36 = vld [vmem:[#allocation2 + $0xc0] sm:$0xff] }
  0xde   :  { %v1699_v61 = vcvt.f32.s32 %v1506_v60  ;;  %v1702_v14 = vcvt.f32.s32 %v1509_v32  ;;  %v756_v41 = vmul.f32 %v2173_v28, %v686_v58  ;;  %v293_v10 = vmul.f32 %v2157_v44, %v232_v25  ;;  %v1910_v25 = vld [vmem:[#allocation2 + $0xc8] sm:$0xff] }
  0xdf   :  { %v2386_v7 = vpop.eup %1873  ;;  %v471_v57 = vsub.f32 1.5, %v470_v48  ;;  %vm474_vm9 = vweird.f32 %v1870_v49  ;;  %v458_v42 = vmul.f32 %v1872_v31, %v2360_v24  ;;  %1877 = vrsqrt.f32 %v2382_v20 }
  0xe0   :  { %v1251_v40 = vpack.c.b16 %v1699_v61, %v1693_v5  ;;  %v1254_v53 = vpack.c.b16 %v1702_v14, %v1696_v63  ;;  %v819_v54 = vmul.f32 20.0, %v755_v2  ;;  %vm463_vm10 = vweird.f32 %v2360_v24  ;;  %vm475_vm12 = vmor %vm473_vm8, %vm474_vm9  ;;  %v1911_v61 = vld [vmem:[#allocation2 + $0x110] sm:$0xff] }
  0xe1   :  { %v2391_v38 = vpop.eup %1875  ;;  %v472_v55 = vmul.f32 %v1870_v49, %v471_v57  ;;  %v459_v34 = vmul.f32 %v1872_v31, %v458_v42  ;;  %v508_v35 = vmul.f32 %v2386_v7, %v2362_v19  ;;  %vm513_vm11 = vweird.f32 %v2362_v19 }
  0xe2   :  { %v1253_v8 = vpack.c.b8 %v1252_v47, %v1251_v40  ;;  %v1256_v56 = vpack.c.b8 %v1255_v33, %v1254_v53  ;;  %v2396_v11 = vmul.f32 20.0, %v756_v41  ;;  %v2401_v62 = vadd.f32 1e-06, %v293_v10  ;;  %v1912_v41 = vld [vmem:[#allocation2 + $0x118] sm:$0xff] }
  0xe3   :  { %v476_v3 = vsel %vm475_vm12, %v1870_v49, %v472_v55  ;;  %v460_v4 = vmul.f32 0.5, %v459_v34  ;;  %v509_v6 = vmul.f32 %v2386_v7, %v508_v35  ;;  %v498_v51 = vmul.f32 %v2391_v38, %v2372_v30  ;;  %v1913_v55 = vld [vmem:[#allocation2 + $0x100] sm:$0xff]  ;;  %v1914_v35 = vld [vmem:[#allocation2 + $0x108] sm:$0xff] }
  0xe4   :  { %vm503_vm13 = vweird.f32 %v2372_v30  ;;  %1291 = vst [vmem:[#allocation7 + $0x20] sm:$0xff] %v1253_v8  ;;  %v1535_v15 = vmax.f32 %v819_v54, -128.0  ;;  %v683_v23 = vmul.f32 %v1907_v22, %v476_v3  ;;  %v684_v43 = vmul.f32 %v1908_v12, %v476_v3 }
  0xe5   :  { %v292_v9 = vmul.f32 %v2157_v44, %v229_v52  ;;  %v2408_v39 = vpop.eup %1877  ;;  %1292 = vst [vmem:[#allocation7 + $0x28] sm:$0xff] %v1256_v56  ;;  %v461_v37 = vsub.f32 1.5, %v460_v4  ;;  %vm464_vm14 = vweird.f32 %v1872_v31  ;;  %v510_v49 = vmul.f32 0.5, %v509_v6 }
  0xe6   :  { %v499_v50 = vmul.f32 %v2391_v38, %v498_v51  ;;  %v753_v21 = vmul.f32 %v2171_v27, %v683_v23  ;;  %v754_v13 = vmul.f32 %v2173_v28, %v684_v43  ;;  %vm514_vm15 = vweird.f32 %v2386_v7  ;;  %vm465_vm0 = vmor %vm463_vm10, %vm464_vm14 }
  0xe7   :  { %v488_v45 = vmul.f32 %v2408_v39, %v2382_v20  ;;  %v462_v46 = vmul.f32 %v1872_v31, %v461_v37  ;;  %v511_v26 = vsub.f32 1.5, %v510_v49  ;;  %1879 = vrsqrt.f32 %v2401_v62  ;;  %vm515_vm2 = vmor %vm513_vm11, %vm514_vm15  ;;  %v226_v37 = vpop.xlane.xlu0 %225 }
  0xe8   :  { %v500_v17 = vmul.f32 0.5, %v499_v50  ;;  %v2417_v18 = vmin.f32 %v1535_v15, 127.0  ;;  %v1538_v59 = vmax.f32 %v2396_v11, -128.0  ;;  %v817_v0 = vmul.f32 20.0, %v753_v21  ;;  %v1915_v21 = vld [vmem:[#allocation2 + $0xf0] sm:$0xff] }
  0xe9   :  { %v489_v5 = vmul.f32 %v2408_v39, %v488_v45  ;;  %v466_v1 = vsel %vm465_vm0, %v1872_v31, %v462_v46  ;;  %v512_v29 = vmul.f32 %v2386_v7, %v511_v26  ;;  %vm504_vm1 = vweird.f32 %v2391_v38  ;;  %v1916_v45 = vld [vmem:[#allocation2 + $0xf8] sm:$0xff] }
  0xea   :  { %v501_v58 = vsub.f32 1.5, %v500_v17  ;;  %v818_v63 = vmul.f32 20.0, %v754_v13  ;;  %v681_v16 = vmul.f32 %v1909_v36, %v466_v1  ;;  %v682_v60 = vmul.f32 %v1910_v25, %v466_v1  ;;  %vm505_vm4 = vmor %vm503_vm13, %vm504_vm1 }
  0xeb   :  { %v2429_v24 = vadd.f32 1e-06, %v292_v9  ;;  %v516_v32 = vsel %vm515_vm2, %v2386_v7, %v512_v29  ;;  %v490_v31 = vmul.f32 0.5, %v489_v5  ;;  %vm493_vm3 = vweird.f32 %v2382_v20 }
  0xec   :  { %v502_v2 = vmul.f32 %v2391_v38, %v501_v58  ;;  %v1529_v47 = vmax.f32 %v817_v0, -128.0  ;;  %v751_v33 = vmul.f32 %v2171_v27, %v681_v16  ;;  %v752_v48 = vmul.f32 %v2173_v28, %v682_v60 }
  0xed   :  { %vm494_vm5 = vweird.f32 %v2408_v39  ;;  %v2441_v19 = vpop.eup %1879  ;;  %v691_v14 = vmul.f32 %v1911_v61, %v516_v32  ;;  %v692_v10 = vmul.f32 %v1912_v41, %v516_v32  ;;  %v491_v57 = vsub.f32 1.5, %v490_v31 }
  0xee   :  { %v506_v7 = vsel %vm505_vm4, %v2391_v38, %v502_v2  ;;  %v1532_v42 = vmax.f32 %v818_v63, -128.0  ;;  %v815_v40 = vmul.f32 20.0, %v751_v33  ;;  %v816_v53 = vmul.f32 20.0, %v752_v48  ;;  %vm495_vm6 = vmor %vm493_vm3, %vm494_vm5  ;;  %v241_v2 = vpop.xlane.xlu2 %240 }
  0xef   :  { %1881 = vrsqrt.f32 %v2429_v24  ;;  %v761_v54 = vmul.f32 %v2171_v27, %v691_v14  ;;  %v762_v30 = vmul.f32 %v2173_v28, %v692_v10  ;;  %v689_v34 = vmul.f32 %v1913_v55, %v506_v7  ;;  %v238_v10 = vpop.xlane.xlu1 %237 }
  0xf0   :  { %v690_v52 = vmul.f32 %v1914_v35, %v506_v7  ;;  %v1523_v8 = vmax.f32 %v815_v40, -128.0  ;;  %v1526_v56 = vmax.f32 %v816_v53, -128.0  ;;  %v492_v11 = vmul.f32 %v2408_v39, %v491_v57 }
  0xf1   :  { %v538_v38 = vmul.f32 %v2441_v19, %v2401_v62  ;;  %v2450_v3 = vmin.f32 %v1538_v59, 127.0  ;;  %v825_v4 = vmul.f32 20.0, %v761_v54  ;;  %v826_v6 = vmul.f32 20.0, %v762_v30 }
  0xf2   :  { %v759_v51 = vmul.f32 %v2171_v27, %v689_v34  ;;  %v1729_v15 = vcvt.f32.s32 %v2417_v18  ;;  %v496_v22 = vsel %vm495_vm6, %v2408_v39, %v492_v11  ;;  %v1530_v23 = vmin.f32 %v1529_v47, 127.0 }
  0xf3   :  { %v1533_v12 = vmin.f32 %v1532_v42, 127.0  ;;  %v1524_v43 = vmin.f32 %v1523_v8, 127.0  ;;  %v760_v9 = vmul.f32 %v2173_v28, %v690_v52  ;;  %v1527_v50 = vmin.f32 %v1526_v56, 127.0 }
  0xf4   :  { %v687_v13 = vmul.f32 %v1915_v21, %v496_v22  ;;  %v688_v46 = vmul.f32 %v1916_v45, %v496_v22  ;;  %v539_v20 = vmul.f32 %v2441_v19, %v538_v38  ;;  %v1732_v26 = vcvt.f32.s32 %v2450_v3  ;;  %v1917_v3 = vld [vmem:[#allocation2 + $0x140] sm:$0xff] }
  0xf5   :  { %v2460_v49 = vpop.eup %1881  ;;  %v1553_v17 = vmax.f32 %v825_v4, -128.0  ;;  %v1556_v59 = vmax.f32 %v826_v6, -128.0  ;;  %v823_v39 = vmul.f32 20.0, %v759_v51  ;;  %vm543_vm7 = vweird.f32 %v2401_v62 }
  0xf6   :  { %v757_v0 = vmul.f32 %v2171_v27, %v687_v13  ;;  %v758_v5 = vmul.f32 %v2173_v28, %v688_v46  ;;  %v291_v1 = vmul.f32 %v2157_v44, %v226_v37  ;;  %v1723_v29 = vcvt.f32.s32 %v1530_v23  ;;  %v250_v18 = vpop.xlane.xlu2 %249  ;;  %v1918_v13 = vld [vmem:[#allocation2 + $0x148] sm:$0xff] }
  0xf7   :  { %v1726_v58 = vcvt.f32.s32 %v1533_v12  ;;  %v1717_v63 = vcvt.f32.s32 %v1524_v43  ;;  %v824_v36 = vmul.f32 20.0, %v760_v9  ;;  %v1720_v16 = vcvt.f32.s32 %v1527_v50  ;;  %v235_v12 = vpop.xlane.xlu0 %234 }
  0xf8   :  { %v821_v25 = vmul.f32 20.0, %v757_v0  ;;  %v822_v60 = vmul.f32 20.0, %v758_v5  ;;  %v540_v32 = vmul.f32 0.5, %v539_v20  ;;  %v2468_v31 = vmin.f32 %v1553_v17, 127.0 }
  0xf9   :  { %v2470_v47 = vmin.f32 %v1556_v59, 127.0  ;;  %v1547_v33 = vmax.f32 %v823_v39, -128.0  ;;  %v528_v48 = vmul.f32 %v2460_v49, %v2429_v24  ;;  %vm544_vm8 = vweird.f32 %v2441_v19  ;;  %v1920_v59 = vld [vmem:[#allocation2 + $0x138] sm:$0xff] }
  0xfa   :  { %v1541_v61 = vmax.f32 %v821_v25, -128.0  ;;  %v1544_v14 = vmax.f32 %v822_v60, -128.0  ;;  %v541_v41 = vsub.f32 1.5, %v540_v32  ;;  %v1257_v7 = vpack.c.b16 %v1723_v29, %v1717_v63  ;;  %vm545_vm9 = vmor %vm543_vm7, %vm544_vm8 }
  0xfb   :  { %v1550_v57 = vmax.f32 %v824_v36, -128.0  ;;  %v529_v42 = vmul.f32 %v2460_v49, %v528_v48  ;;  %v2476_v40 = vadd.f32 1e-06, %v291_v1  ;;  %v296_v55 = vmul.f32 %v2157_v44, %v241_v2 }
  0xfc   :  { %v1542_v53 = vmin.f32 %v1541_v61, 127.0  ;;  %v1545_v54 = vmin.f32 %v1544_v14, 127.0  ;;  %v542_v30 = vmul.f32 %v2441_v19, %v541_v41  ;;  %v1548_v34 = vmin.f32 %v1547_v33, 127.0 }
  0xfd   :  { %v530_v35 = vmul.f32 0.5, %v529_v42  ;;  %1883 = vrsqrt.f32 %v2476_v40  ;;  %v295_v52 = vmul.f32 %v2157_v44, %v238_v10  ;;  %v2485_v38 = vadd.f32 1e-06, %v296_v55 }
  0xfe   :  { %v1735_v8 = vcvt.f32.s32 %v1542_v53  ;;  %v1738_v56 = vcvt.f32.s32 %v1545_v54  ;;  %v546_v11 = vsel %vm545_vm9, %v2441_v19, %v542_v30  ;;  %vm534_vm10 = vweird.f32 %v2460_v49 }
  0xff   :  { %v697_v4 = vmul.f32 %v1917_v3, %v546_v11  ;;  %v531_v6 = vsub.f32 1.5, %v530_v35  ;;  %v2488_v51 = vadd.f32 1e-06, %v295_v52  ;;  %v1260_v62 = vpack.c.b16 %v1726_v58, %v1720_v16 }
 0x100   :  { %v1258_v22 = vpack.c.b16 %v1735_v8, %v1729_v15  ;;  %v1261_v23 = vpack.c.b16 %v1738_v56, %v1732_v26  ;;  %1885 = vrsqrt.f32 %v2485_v38  ;;  %v2493_v43 = vmin.f32 %v1550_v57, 127.0  ;;  %v1919_v26 = vld [vmem:[#allocation2 + $0x130] sm:$0xff] }
 0x101   :  { %v532_v19 = vmul.f32 %v2460_v49, %v531_v6  ;;  %vm533_vm11 = vweird.f32 %v2429_v24  ;;  %1887 = vrsqrt.f32 %v2488_v51  ;;  %v1747_v9 = vcvt.f32.s32 %v2468_v31 }
 0x102   :  { %v1741_v37 = vcvt.f32.s32 %v1548_v34  ;;  %v1259_v50 = vpack.c.b8 %v1258_v22, %v1257_v7  ;;  %v1262_v21 = vpack.c.b8 %v1261_v23, %v1260_v62  ;;  %vm535_vm12 = vmor %vm533_vm11, %vm534_vm10  ;;  %v698_v45 = vmul.f32 %v1918_v13, %v546_v11  ;;  %v247_v7 = vpop.xlane.xlu1 %246  ;;  %v1921_v62 = vld [vmem:[#allocation2 + $0x120] sm:$0xff]  ;;  %v1922_v23 = vld [vmem:[#allocation2 + $0x128] sm:$0xff] }
 0x103   :  { %v1884_v15 = vpop.eup %1883  ;;  %v767_v46 = vmul.f32 %v2171_v27, %v697_v4  ;;  %v536_v20 = vsel %vm535_vm12, %v2460_v49, %v532_v19  ;;  %v294_v24 = vmul.f32 %v2157_v44, %v235_v12  ;;  %v1750_v5 = vcvt.f32.s32 %v2470_v47 }
 0x104   :  { %1293 = vst [vmem:[#allocation7 + $0x30] sm:$0xff] %v1259_v50  ;;  %v695_v17 = vmul.f32 %v1919_v26, %v536_v20  ;;  %v696_v39 = vmul.f32 %v1920_v59, %v536_v20  ;;  %v518_v0 = vmul.f32 %v1884_v15, %v2476_v40  ;;  %v1744_v1 = vcvt.f32.s32 %v2493_v43 }
 0x105   :  { %1294 = vst [vmem:[#allocation7 + $0x38] sm:$0xff] %v1262_v21  ;;  %v299_v29 = vmul.f32 %v2157_v44, %v250_v18  ;;  %v2508_v63 = vpack.c.b16 %v1747_v9, %v1741_v37  ;;  %v768_v60 = vmul.f32 %v2173_v28, %v698_v45  ;;  %v831_v32 = vmul.f32 20.0, %v767_v46  ;;  %v1923_v46 = vld [vmem:[#allocation2 + $0x170] sm:$0xff] }
 0x106   :  { %v1886_v58 = vpop.eup %1885  ;;  %v765_v49 = vmul.f32 %v2171_v27, %v695_v17  ;;  %v766_v36 = vmul.f32 %v2173_v28, %v696_v39  ;;  %v519_v16 = vmul.f32 %v1884_v15, %v518_v0  ;;  %v2514_v31 = vadd.f32 1e-06, %v294_v24  ;;  %v1924_v24 = vld [vmem:[#allocation2 + $0x178] sm:$0xff] }
 0x107   :  { %v1888_v25 = vpop.eup %1887  ;;  %v568_v2 = vmul.f32 %v1886_v58, %v2485_v38  ;;  %vm523_vm13 = vweird.f32 %v2476_v40  ;;  %vm573_vm14 = vweird.f32 %v2485_v38  ;;  %v2519_v10 = vadd.f32 1e-06, %v299_v29  ;;  %v1925_v29 = vld [vmem:[#allocation2 + $0x160] sm:$0xff] }
 0x108   :  { %v829_v33 = vmul.f32 20.0, %v765_v49  ;;  %v830_v48 = vmul.f32 20.0, %v766_v36  ;;  %v520_v61 = vmul.f32 0.5, %v519_v16  ;;  %v558_v14 = vmul.f32 %v1888_v25, %v2488_v51  ;;  %v1926_v36 = vld [vmem:[#allocation2 + $0x168] sm:$0xff] }
 0x109   :  { %v569_v41 = vmul.f32 %v1886_v58, %v568_v2  ;;  %vm524_vm15 = vweird.f32 %v1884_v15  ;;  %v2521_v54 = vmul.f32 20.0, %v768_v60  ;;  %v1571_v30 = vmax.f32 %v831_v32, -128.0 }
 0x10a   :  { %v1565_v57 = vmax.f32 %v829_v33, -128.0  ;;  %v521_v42 = vsub.f32 1.5, %v520_v61  ;;  %v559_v53 = vmul.f32 %v1888_v25, %v558_v14  ;;  %1889 = vrsqrt.f32 %v2514_v31  ;;  %vm525_vm0 = vmor %vm523_vm13, %vm524_vm15  ;;  %v244_v61 = vpop.xlane.xlu0 %243 }
 0x10b   :  { %v570_v55 = vmul.f32 0.5, %v569_v41  ;;  %v1568_v34 = vmax.f32 %v830_v48, -128.0  ;;  %v298_v8 = vmul.f32 %v2157_v44, %v247_v7  ;;  %vm574_vm1 = vweird.f32 %v1886_v58 }
 0x10c   :  { %v522_v35 = vmul.f32 %v1884_v15, %v521_v42  ;;  %v560_v52 = vmul.f32 0.5, %v559_v53  ;;  %v2525_v56 = vmin.f32 %v1565_v57, 127.0  ;;  %1891 = vrsqrt.f32 %v2519_v10  ;;  %vm575_vm4 = vmor %vm573_vm14, %vm574_vm1 }
 0x10d   :  { %v571_v11 = vsub.f32 1.5, %v570_v55  ;;  %vm563_vm2 = vweird.f32 %v2488_v51  ;;  %vm564_vm3 = vweird.f32 %v1888_v25  ;;  %v1574_v6 = vmax.f32 %v2521_v54, -128.0 }
 0x10e   :  { %v526_v3 = vsel %vm525_vm0, %v1884_v15, %v522_v35  ;;  %v561_v4 = vsub.f32 1.5, %v560_v52  ;;  %v2532_v9 = vmin.f32 %v1571_v30, 127.0  ;;  %v1569_v40 = vmin.f32 %v1568_v34, 127.0  ;;  %vm565_vm5 = vmor %vm563_vm2, %vm564_vm3 }
 0x10f   :  { %v693_v22 = vmul.f32 %v1921_v62, %v526_v3  ;;  %v694_v12 = vmul.f32 %v1922_v23, %v526_v3  ;;  %v572_v19 = vmul.f32 %v1886_v58, %v571_v11  ;;  %v2536_v50 = vadd.f32 1e-06, %v298_v8 }
 0x110   :  { %v562_v37 = vmul.f32 %v1888_v25, %v561_v4  ;;  %v1890_v21 = vpop.eup %1889  ;;  %v1759_v18 = vcvt.f32.s32 %v2525_v56  ;;  %v297_v34 = vmul.f32 %v2157_v44, %v244_v61  ;;  %v1266_v11 = vpack.c.b16 %v1750_v5, %v1744_v1 }
 0x111   :  { %v763_v15 = vmul.f32 %v2171_v27, %v693_v22  ;;  %v764_v13 = vmul.f32 %v2173_v28, %v694_v12  ;;  %v576_v45 = vsel %vm575_vm4, %v1886_v58, %v572_v19  ;;  %v548_v17 = vmul.f32 %v1890_v21, %v2514_v31  ;;  %v259_v19 = vpop.xlane.xlu2 %258 }
 0x112   :  { %v703_v20 = vmul.f32 %v1923_v46, %v576_v45  ;;  %v704_v38 = vmul.f32 %v1924_v24, %v576_v45  ;;  %v566_v26 = vsel %vm565_vm5, %v1888_v25, %v562_v37  ;;  %v2545_v59 = vpop.eup %1891  ;;  %v1762_v58 = vcvt.f32.s32 %v1569_v40  ;;  %v256_v40 = vpop.xlane.xlu1 %255  ;;  %v1928_v46 = vld [vmem:[#allocation2 + $0x158] sm:$0xff] }
 0x113   :  { %v827_v39 = vmul.f32 20.0, %v763_v15  ;;  %v828_v0 = vmul.f32 20.0, %v764_v13  ;;  %v701_v49 = vmul.f32 %v1925_v29, %v566_v26  ;;  %v702_v16 = vmul.f32 %v1926_v36, %v566_v26  ;;  %v253_v29 = vpop.xlane.xlu0 %252 }
 0x114   :  { %v773_v60 = vmul.f32 %v2171_v27, %v703_v20  ;;  %v774_v51 = vmul.f32 %v2173_v28, %v704_v38  ;;  %v549_v32 = vmul.f32 %v1890_v21, %v548_v17  ;;  %v598_v7 = vmul.f32 %v2545_v59, %v2519_v10 }
 0x115   :  { %v1559_v2 = vmax.f32 %v827_v39, -128.0  ;;  %v1562_v33 = vmax.f32 %v828_v0, -128.0  ;;  %v771_v25 = vmul.f32 %v2171_v27, %v701_v49  ;;  %v772_v48 = vmul.f32 %v2173_v28, %v702_v16 }
 0x116   :  { %v837_v14 = vmul.f32 20.0, %v773_v60  ;;  %v550_v41 = vmul.f32 0.5, %v549_v32  ;;  %1893 = vrsqrt.f32 %v2536_v50  ;;  %v838_v53 = vmul.f32 20.0, %v774_v51 }
 0x117   :  { %v1560_v57 = vmin.f32 %v1559_v2, 127.0  ;;  %v1563_v42 = vmin.f32 %v1562_v33, 127.0  ;;  %v835_v54 = vmul.f32 20.0, %v771_v25  ;;  %v836_v30 = vmul.f32 20.0, %v772_v48 }
 0x118   :  { %v551_v55 = vsub.f32 1.5, %v550_v41  ;;  %vm554_vm6 = vweird.f32 %v1890_v21  ;;  %v1589_v8 = vmax.f32 %v837_v14, -128.0  ;;  %v599_v56 = vmul.f32 %v2545_v59, %v598_v7 }
 0x119   :  { %v1753_v35 = vcvt.f32.s32 %v1560_v57  ;;  %v1756_v52 = vcvt.f32.s32 %v1563_v42  ;;  %v2560_v3 = vmin.f32 %v1574_v6, 127.0  ;;  %vm553_vm7 = vweird.f32 %v2514_v31 }
 0x11a   :  { %v552_v4 = vmul.f32 %v1890_v21, %v551_v55  ;;  %v1592_v23 = vmax.f32 %v838_v53, -128.0  ;;  %v1583_v12 = vmax.f32 %v835_v54, -128.0  ;;  %vm555_vm8 = vmor %vm553_vm7, %vm554_vm6  ;;  %v1765_v15 = vcvt.f32.s32 %v2532_v9 }
 0x11b   :  { %v1264_v62 = vpack.c.b16 %v1759_v18, %v1753_v35  ;;  %v1267_v22 = vpack.c.b16 %v1762_v58, %v1756_v52  ;;  %v1586_v43 = vmax.f32 %v836_v30, -128.0  ;;  %v2566_v47 = vadd.f32 1e-06, %v297_v34  ;;  %v1927_v18 = vld [vmem:[#allocation2 + $0x150] sm:$0xff] }
 0x11c   :  { %v2563_v37 = vpop.eup %1893  ;;  %v556_v13 = vsel %vm555_vm8, %v1890_v21, %v552_v4  ;;  %v1590_v6 = vmin.f32 %v1589_v8, 127.0  ;;  %v600_v31 = vmul.f32 0.5, %v599_v56  ;;  %v302_v24 = vmul.f32 %v2157_v44, %v259_v19 }
 0x11d   :  { %v1265_v5 = vpack.c.b8 %v1264_v62, %v2508_v63  ;;  %v1268_v1 = vpack.c.b8 %v1267_v22, %v1266_v11  ;;  %v699_v45 = vmul.f32 %v1927_v18, %v556_v13  ;;  %v700_v20 = vmul.f32 %v1928_v46, %v556_v13  ;;  %v1929_v13 = vld [vmem:[#allocation2 + $0x190] sm:$0xff] }
 0x11e   :  { %v301_v38 = vmul.f32 %v2157_v44, %v256_v40  ;;  %v1768_v26 = vcvt.f32.s32 %v2560_v3  ;;  %v1593_v9 = vmin.f32 %v1592_v23, 127.0  ;;  %v1584_v21 = vmin.f32 %v1583_v12, 127.0 }
 0x11f   :  { %1295 = vst [vmem:[#allocation7 + $0x40] sm:$0xff] %v1265_v5  ;;  %v588_v17 = vmul.f32 %v2563_v37, %v2536_v50  ;;  %v1587_v63 = vmin.f32 %v1586_v43, 127.0  ;;  %v769_v39 = vmul.f32 %v2171_v27, %v699_v45  ;;  %v770_v0 = vmul.f32 %v2173_v28, %v700_v20  ;;  %v1930_v5 = vld [vmem:[#allocation2 + $0x198] sm:$0xff]  ;;  %v1931_v45 = vld [vmem:[#allocation2 + $0x1a0] sm:$0xff]  ;;  %v1932_v20 = vld [vmem:[#allocation2 + $0x1a8] sm:$0xff] }
 0x120   :  { %1296 = vst [vmem:[#allocation7 + $0x48] sm:$0xff] %v1268_v1  ;;  %1895 = vrsqrt.f32 %v2566_v47  ;;  %v1783_v49 = vcvt.f32.s32 %v1590_v6  ;;  %v601_v36 = vsub.f32 1.5, %v600_v31  ;;  %vm603_vm9 = vweird.f32 %v2519_v10 }
 0x121   :  { %v589_v16 = vmul.f32 %v2563_v37, %v588_v17  ;;  %v833_v58 = vmul.f32 20.0, %v769_v39  ;;  %v834_v60 = vmul.f32 20.0, %v770_v0  ;;  %v2579_v51 = vadd.f32 1e-06, %v302_v24  ;;  %v1934_v0 = vld [vmem:[#allocation2 + $0x188] sm:$0xff] }
 0x122   :  { %v2581_v32 = vadd.f32 1e-06, %v301_v38  ;;  %v1786_v2 = vcvt.f32.s32 %v1593_v9  ;;  %v1777_v33 = vcvt.f32.s32 %v1584_v21  ;;  %v300_v48 = vmul.f32 %v2157_v44, %v253_v29 }
 0x123   :  { %v590_v25 = vmul.f32 0.5, %v589_v16  ;;  %v1780_v61 = vcvt.f32.s32 %v1587_v63  ;;  %v1577_v14 = vmax.f32 %v833_v58, -128.0  ;;  %v1580_v41 = vmax.f32 %v834_v60, -128.0  ;;  %v1933_v63 = vld [vmem:[#allocation2 + $0x180] sm:$0xff] }
 0x124   :  { %1897 = vrsqrt.f32 %v2579_v51  ;;  %v602_v7 = vmul.f32 %v2545_v59, %v601_v36  ;;  %vm593_vm10 = vweird.f32 %v2536_v50  ;;  %vm594_vm11 = vweird.f32 %v2563_v37 }
 0x125   :  { %v591_v57 = vsub.f32 1.5, %v590_v25  ;;  %1899 = vrsqrt.f32 %v2581_v32  ;;  %v1578_v53 = vmin.f32 %v1577_v14, 127.0  ;;  %v1581_v54 = vmin.f32 %v1580_v41, 127.0  ;;  %vm595_vm13 = vmor %vm593_vm10, %vm594_vm11 }
 0x126   :  { %v1896_v42 = vpop.eup %1895  ;;  %v2589_v30 = vadd.f32 1e-06, %v300_v48  ;;  %v1270_v55 = vpack.c.b16 %v1783_v49, %v1777_v33  ;;  %vm604_vm12 = vweird.f32 %v2545_v59  ;;  %v1273_v52 = vpack.c.b16 %v1786_v2, %v1780_v61 }
 0x127   :  { %v592_v34 = vmul.f32 %v2563_v37, %v591_v57  ;;  %v578_v35 = vmul.f32 %v1896_v42, %v2566_v47  ;;  %v1771_v8 = vcvt.f32.s32 %v1578_v53  ;;  %v1774_v56 = vcvt.f32.s32 %v1581_v54  ;;  %vm605_vm14 = vmor %vm603_vm9, %vm604_vm12  ;;  %v262_v53 = vpop.xlane.xlu0 %261 }
 0x128   :  { %1901 = vrsqrt.f32 %v2589_v30  ;;  %v606_v43 = vsel %vm605_vm14, %v2545_v59, %v602_v7  ;;  %vm584_vm15 = vweird.f32 %v1896_v42  ;;  %vm583_vm0 = vweird.f32 %v2566_v47 }
 0x129   :  { %v579_v11 = vmul.f32 %v1896_v42, %v578_v35  ;;  %v1269_v4 = vpack.c.b16 %v1771_v8, %v1765_v15  ;;  %v1272_v62 = vpack.c.b16 %v1774_v56, %v1768_v26  ;;  %v596_v22 = vsel %vm595_vm13, %v2563_v37, %v592_v34  ;;  %v265_v15 = vpop.xlane.xlu1 %264  ;;  %vm585_vm1 = vmor %vm583_vm0, %vm584_vm15 }
 0x12a   :  { %v2597_v3 = vpop.eup %1897  ;;  %v707_v50 = vmul.f32 %v1929_v13, %v596_v22  ;;  %v708_v1 = vmul.f32 %v1930_v5, %v596_v22  ;;  %v709_v46 = vmul.f32 %v1931_v45, %v606_v43  ;;  %v710_v24 = vmul.f32 %v1932_v20, %v606_v43  ;;  %v1935_v22 = vld [vmem:[#allocation2 + $0x1b0] sm:$0xff] }
 0x12b   :  { %v2600_v23 = vpop.eup %1899  ;;  %v580_v12 = vmul.f32 0.5, %v579_v11  ;;  %v1271_v19 = vpack.c.b8 %v1270_v55, %v1269_v4  ;;  %v1274_v40 = vpack.c.b8 %v1273_v52, %v1272_v62  ;;  %v628_v37 = vmul.f32 %v2597_v3, %v2579_v51 }
 0x12c   :  { %v618_v10 = vmul.f32 %v2600_v23, %v2581_v32  ;;  %v304_v38 = vmul.f32 %v2157_v44, %v265_v15  ;;  %v777_v26 = vmul.f32 %v2171_v27, %v707_v50  ;;  %v778_v9 = vmul.f32 %v2173_v28, %v708_v1 }
 0x12d   :  { %v581_v6 = vsub.f32 1.5, %v580_v12  ;;  %1297 = vst [vmem:[#allocation7 + $0x50] sm:$0xff] %v1271_v19  ;;  %v629_v47 = vmul.f32 %v2597_v3, %v628_v37  ;;  %v779_v58 = vmul.f32 %v2171_v27, %v709_v46  ;;  %v780_v60 = vmul.f32 %v2173_v28, %v710_v24  ;;  %v1936_v12 = vld [vmem:[#allocation2 + $0x1b8] sm:$0xff] }
 0x12e   :  { %v1902_v31 = vpop.eup %1901  ;;  %1298 = vst [vmem:[#allocation7 + $0x58] sm:$0xff] %v1274_v40  ;;  %v619_v49 = vmul.f32 %v2600_v23, %v618_v10  ;;  %v2616_v16 = vadd.f32 1e-06, %v304_v38  ;;  %v841_v25 = vmul.f32 20.0, %v777_v26  ;;  %v842_v48 = vmul.f32 20.0, %v778_v9 }
 0x12f   :  { %v582_v18 = vmul.f32 %v1896_v42, %v581_v6  ;;  %v608_v59 = vmul.f32 %v1902_v31, %v2589_v30  ;;  %vm614_vm2 = vweird.f32 %v1902_v31  ;;  %v630_v14 = vmul.f32 0.5, %v629_v47 }
 0x130   :  { %v620_v41 = vmul.f32 0.5, %v619_v49  ;;  %vm613_vm3 = vweird.f32 %v2589_v30  ;;  %1903 = vrsqrt.f32 %v2616_v16  ;;  %v843_v54 = vmul.f32 20.0, %v779_v58 }
 0x131   :  { %v586_v21 = vsel %vm585_vm1, %v1896_v42, %v582_v18  ;;  %v609_v17 = vmul.f32 %v1902_v31, %v608_v59  ;;  %v844_v55 = vmul.f32 20.0, %v780_v60  ;;  %vm615_vm4 = vmor %vm613_vm3, %vm614_vm2  ;;  %v1601_v34 = vmax.f32 %v841_v25, -128.0  ;;  %v1938_v60 = vld [vmem:[#allocation2 + $0x1d8] sm:$0xff] }
 0x132   :  { %v705_v39 = vmul.f32 %v1933_v63, %v586_v21  ;;  %v706_v29 = vmul.f32 %v1934_v0, %v586_v21  ;;  %v1604_v35 = vmax.f32 %v842_v48, -128.0  ;;  %v631_v8 = vsub.f32 1.5, %v630_v14  ;;  %v1939_v48 = vld [vmem:[#allocation2 + $0x1c0] sm:$0xff] }
 0x133   :  { %v610_v36 = vmul.f32 0.5, %v609_v17  ;;  %v621_v56 = vsub.f32 1.5, %v620_v41  ;;  %v303_v11 = vmul.f32 %v2157_v44, %v262_v53  ;;  %v1607_v40 = vmax.f32 %v843_v54, -128.0 }
 0x134   :  { %v775_v2 = vmul.f32 %v2171_v27, %v705_v39  ;;  %v776_v33 = vmul.f32 %v2173_v28, %v706_v29  ;;  %v1610_v43 = vmax.f32 %v844_v55, -128.0  ;;  %vm633_vm5 = vweird.f32 %v2579_v51 }
 0x135   :  { %v611_v61 = vsub.f32 1.5, %v610_v36  ;;  %vm634_vm6 = vweird.f32 %v2597_v3  ;;  %v1602_v50 = vmin.f32 %v1601_v34, 127.0  ;;  %v1605_v5 = vmin.f32 %v1604_v35, 127.0  ;;  %v1937_v36 = vld [vmem:[#allocation2 + $0x1d0] sm:$0xff] }
 0x136   :  { %v839_v7 = vmul.f32 20.0, %v775_v2  ;;  %v840_v57 = vmul.f32 20.0, %v776_v33  ;;  %v1904_v13 = vpop.eup %1903  ;;  %v632_v44 = vmul.f32 %v2597_v3, %v631_v8  ;;  %v622_v15 = vmul.f32 %v2600_v23, %v621_v56  ;;  %vm635_vm8 = vmor %vm633_vm5, %vm634_vm6 }
 0x137   :  { %v612_v42 = vmul.f32 %v1902_v31, %v611_v61  ;;  %vm624_vm7 = vweird.f32 %v2600_v23  ;;  %v1608_v45 = vmin.f32 %v1607_v40, 127.0  ;;  %v1611_v46 = vmin.f32 %v1610_v43, 127.0  ;;  %v1940_v61 = vld [vmem:[#allocation2 + $0x1c8] sm:$0xff] }
 0x138   :  { %v1595_v4 = vmax.f32 %v839_v7, -128.0  ;;  %v1598_v62 = vmax.f32 %v840_v57, -128.0  ;;  %vm623_vm9 = vweird.f32 %v2581_v32  ;;  %v648_v20 = vmul.f32 %v1904_v13, %v2616_v16 }
 0x139   :  { %v616_v52 = vsel %vm615_vm4, %v1902_v31, %v612_v42  ;;  %v2632_v31 = vadd.f32 1e-06, %v303_v11  ;;  %v1795_v24 = vcvt.f32.s32 %v1602_v50  ;;  %v1798_v38 = vcvt.f32.s32 %v1605_v5  ;;  %vm625_vm10 = vmor %vm623_vm9, %vm624_vm7 }
 0x13a   :  { %v711_v30 = vmul.f32 %v1935_v22, %v616_v52  ;;  %v712_v19 = vmul.f32 %v1936_v12, %v616_v52  ;;  %v1596_v37 = vmin.f32 %v1595_v4, 127.0  ;;  %v1599_v10 = vmin.f32 %v1598_v62, 127.0  ;;  %v1941_v62 = vld [vmem:[#allocation2 + $0x1f0] sm:$0xff] }
 0x13b   :  { %v636_v21 = vsel %vm635_vm8, %v2597_v3, %v632_v44  ;;  %v626_v17 = vsel %vm625_vm10, %v2600_v23, %v622_v15  ;;  %v649_v63 = vmul.f32 %v1904_v13, %v648_v20  ;;  %1905 = vrsqrt.f32 %v2632_v31 }
 0x13c   :  { %v781_v1 = vmul.f32 %v2171_v27, %v711_v30  ;;  %v782_v6 = vmul.f32 %v2173_v28, %v712_v19  ;;  %v1789_v39 = vcvt.f32.s32 %v1596_v37  ;;  %v1792_v0 = vcvt.f32.s32 %v1599_v10  ;;  %v1942_v30 = vld [vmem:[#allocation2 + $0x1f8] sm:$0xff] }
 0x13d   :  { %v1801_v47 = vcvt.f32.s32 %v1608_v45  ;;  %v1804_v32 = vcvt.f32.s32 %v1611_v46  ;;  %v650_v49 = vmul.f32 0.5, %v649_v63  ;;  %v715_v58 = vmul.f32 %v1937_v36, %v636_v21 }
 0x13e   :  { %v845_v18 = vmul.f32 20.0, %v781_v1  ;;  %v846_v59 = vmul.f32 20.0, %v782_v6  ;;  %v716_v2 = vmul.f32 %v1938_v60, %v636_v21  ;;  %v713_v3 = vmul.f32 %v1939_v48, %v626_v17 }
 0x13f   :  { %v714_v23 = vmul.f32 %v1940_v61, %v626_v17  ;;  %v651_v14 = vsub.f32 1.5, %v650_v49  ;;  %vm654_vm11 = vweird.f32 %v1904_v13  ;;  %v1275_v41 = vpack.c.b16 %v1795_v24, %v1789_v39 }
 0x140   :  { %v1613_v26 = vmax.f32 %v845_v18, -128.0  ;;  %v1616_v9 = vmax.f32 %v846_v59, -128.0  ;;  %v1278_v7 = vpack.c.b16 %v1798_v38, %v1792_v0  ;;  %vm653_vm12 = vweird.f32 %v2616_v16  ;;  %v1943_v38 = vld [vmem:[#allocation2 + $0x1e0] sm:$0xff] }
 0x141   :  { %v1906_v53 = vpop.eup %1905  ;;  %v652_v54 = vmul.f32 %v1904_v13, %v651_v14  ;;  %vm655_vm13 = vmor %vm653_vm12, %vm654_vm11  ;;  %v785_v52 = vmul.f32 %v2171_v27, %v715_v58  ;;  %v786_v8 = vmul.f32 %v2173_v28, %v716_v2  ;;  %v783_v56 = vmul.f32 %v2171_v27, %v713_v3 }
 0x142   :  { %v1614_v51 = vmin.f32 %v1613_v26, 127.0  ;;  %v1617_v29 = vmin.f32 %v1616_v9, 127.0  ;;  %v638_v35 = vmul.f32 %v1906_v53, %v2632_v31  ;;  %v784_v4 = vmul.f32 %v2173_v28, %v714_v23  ;;  %v1944_v9 = vld [vmem:[#allocation2 + $0x1e8] sm:$0xff] }
 0x143   :  { %v656_v11 = vsel %vm655_vm13, %v1904_v13, %v652_v54  ;;  %v849_v50 = vmul.f32 20.0, %v785_v52  ;;  %v850_v5 = vmul.f32 20.0, %v786_v8  ;;  %v847_v1 = vmul.f32 20.0, %v783_v56 }
 0x144   :  { %v1807_v33 = vcvt.f32.s32 %v1614_v51  ;;  %v1810_v25 = vcvt.f32.s32 %v1617_v29  ;;  %v719_v22 = vmul.f32 %v1941_v62, %v656_v11  ;;  %v720_v12 = vmul.f32 %v1942_v30, %v656_v11 }
 0x145   :  { %v639_v16 = vmul.f32 %v1906_v53, %v638_v35  ;;  %v848_v6 = vmul.f32 20.0, %v784_v4  ;;  %vm644_vm14 = vweird.f32 %v1906_v53  ;;  %vm643_vm15 = vweird.f32 %v2632_v31 }
 0x146   :  { %v1276_v57 = vpack.c.b16 %v1807_v33, %v1801_v47  ;;  %v1279_v42 = vpack.c.b16 %v1810_v25, %v1804_v32  ;;  %v789_v19 = vmul.f32 %v2171_v27, %v719_v22  ;;  %v790_v40 = vmul.f32 %v2173_v28, %v720_v12  ;;  %vm645_vm0 = vmor %vm643_vm15, %vm644_vm14 }
 0x147   :  { %v640_v43 = vmul.f32 0.5, %v639_v16  ;;  %v1625_v10 = vmax.f32 %v849_v50, -128.0  ;;  %v1628_v18 = vmax.f32 %v850_v5, -128.0  ;;  %v1619_v59 = vmax.f32 %v847_v1, -128.0 }
 0x148   :  { %v1277_v55 = vpack.c.b8 %v1276_v57, %v1275_v41  ;;  %v1280_v34 = vpack.c.b8 %v1279_v42, %v1278_v7  ;;  %v853_v13 = vmul.f32 20.0, %v789_v19  ;;  %v854_v15 = vmul.f32 20.0, %v790_v40 }
 0x149   :  { %v641_v44 = vsub.f32 1.5, %v640_v43  ;;  %v1622_v45 = vmax.f32 %v848_v6, -128.0  ;;  %v1626_v39 = vmin.f32 %v1625_v10, 127.0  ;;  %v1629_v0 = vmin.f32 %v1628_v18, 127.0 }
 0x14a   :  { %1299 = vst [vmem:[#allocation7 + $0x60] sm:$0xff] %v1277_v55  ;;  %v1637_v20 = vmax.f32 %v853_v13, -128.0  ;;  %v1640_v24 = vmax.f32 %v854_v15, -128.0  ;;  %v1620_v51 = vmin.f32 %v1619_v59, 127.0 }
 0x14b   :  { %1300 = vst [vmem:[#allocation7 + $0x68] sm:$0xff] %v1280_v34  ;;  %v642_v37 = vmul.f32 %v1906_v53, %v641_v44  ;;  %v1623_v31 = vmin.f32 %v1622_v45, 127.0  ;;  %v1819_v60 = vcvt.f32.s32 %v1626_v39  ;;  %v1822_v2 = vcvt.f32.s32 %v1629_v0 }
 0x14c   :  { %v1638_v29 = vmin.f32 %v1637_v20, 127.0  ;;  %v1641_v47 = vmin.f32 %v1640_v24, 127.0  ;;  %v1813_v33 = vcvt.f32.s32 %v1620_v51 }
 0x14d   :  { %v646_v46 = vsel %vm645_vm0, %v1906_v53, %v642_v37  ;;  %v1816_v25 = vcvt.f32.s32 %v1623_v31 }
 0x14e   :  { %v717_v26 = vmul.f32 %v1943_v38, %v646_v46  ;;  %v718_v21 = vmul.f32 %v1944_v9, %v646_v46  ;;  %v1831_v48 = vcvt.f32.s32 %v1638_v29  ;;  %v1834_v3 = vcvt.f32.s32 %v1641_v47 }
 0x14f   :  { %v1281_v14 = vpack.c.b16 %v1819_v60, %v1813_v33  ;;  %v1284_v41 = vpack.c.b16 %v1822_v2, %v1816_v25 }
 0x150   :  { %v787_v17 = vmul.f32 %v2171_v27, %v717_v26  ;;  %v788_v63 = vmul.f32 %v2173_v28, %v718_v21 }
 0x152   :  { %v851_v32 = vmul.f32 20.0, %v787_v17  ;;  %v852_v49 = vmul.f32 20.0, %v788_v63 }
 0x154   :  { %v1631_v36 = vmax.f32 %v851_v32, -128.0  ;;  %v1634_v58 = vmax.f32 %v852_v49, -128.0 }
 0x156   :  { %v1632_v61 = vmin.f32 %v1631_v36, 127.0  ;;  %v1635_v27 = vmin.f32 %v1634_v58, 127.0 }
 0x158   :  { %v1825_v23 = vcvt.f32.s32 %v1632_v61  ;;  %v1828_v28 = vcvt.f32.s32 %v1635_v27 }
 0x15a   :  { %v1282_v7 = vpack.c.b16 %v1831_v48, %v1825_v23  ;;  %v1285_v57 = vpack.c.b16 %v1834_v3, %v1828_v28 }
 0x15c   :  { %v1283_v42 = vpack.c.b8 %v1282_v7, %v1281_v14  ;;  %v1286_v53 = vpack.c.b8 %v1285_v57, %v1284_v41 }
 0x15e   :  { %1301 = vst [vmem:[#allocation7 + $0x70] sm:$0xff] %v1283_v42 }
 0x15f   :  { %1302 = vst [vmem:[#allocation7 + $0x78] sm:$0xff] %v1286_v53 }
 0x160   :  { %1315 = dma.vmem_to_hbm [thread:$0]  %s1308_s1, 2048, %s1310_s23, [#allocation4], %s2024_s17, %s2024_s17, %s2025_s18  }
 0x161   :  { %2021 = dma.done.wait [#allocation4], 2048  }
 0x162   :  { %2022 = vsyncadd [#allocation4], 4294965248 }
 0x163   :  { %1320 = vsyncpa [#allocation3], 1 }
 0x164   :  { %1321 = vsyncpa [#allocation6], 1 }
 0x165   :  { %1322 = vsyncpa [#allocation4], 1 }

</bundles_post_ra>
